<compile_context>
chip_gen: v7x
topology: tpu7x:2x2x1
jax: 0.10.0
libtpu: 0.0.40
codegen_flags: <defaults>
</compile_context>

<pallas_src>
import functools

import jax
import jax.numpy as jnp
from jax.experimental import pallas as pl
from jax.experimental.pallas import tpu as pltpu

KERNEL = 5
PADDING = 2


def _conv_prelu_kernel(x_ref, w_ref, b_ref, a_ref, o_ref, *,
                       kernel_size, w_padded):
    """Direct KxK conv (stride 1) + bias + PReLU for one image.

    x_ref : (1, Cin, L)       zero-padded image, rows flattened, lane-dense.
    w_ref : (T, Cout, Cin)    per-tap weights, T = K*K.
    b_ref : (Cout, 1)         bias (VMEM).
    a_ref : (1,)              PReLU alpha (SMEM scalar).
    o_ref : (1, Cout, H*Wp)   output rows at padded width Wp (cropped to W in
                              the wrapper); lane-dense last dim.
    """
    cout = o_ref.shape[1]
    hwp = o_ref.shape[2]                      # H * Wp
    x = x_ref[0]                              # (Cin, L) — single VMEM load

    acc = jnp.zeros((cout, hwp), jnp.float32)
    # 25 taps unrolled at trace time.  Because rows are flattened at the
    # padded width Wp, tap (kh, kw) is a *contiguous* window of length H*Wp
    # starting at kh*Wp + kw; columns w >= W of each row pick up wrap/pad
    # garbage but are discarded by the wrapper crop.
    for kh in range(kernel_size):
        for kw in range(kernel_size):
            t = kh * kernel_size + kw
            off = kh * w_padded + kw
            xs = x[:, off:off + hwp]          # (Cin, H*Wp) static slice
            acc = acc + jnp.dot(w_ref[t], xs,
                                preferred_element_type=jnp.float32)

    y = acc + b_ref[...]                      # (Cout, 1) broadcast over lanes
    alpha = a_ref[0]
    y = jnp.where(y > 0, y, alpha * y)        # PReLU (single shared alpha)
    o_ref[0] = y.astype(o_ref.dtype)


def conv_prelu(x_nchw, weight_oihw, bias, alpha):
    """Equivalent of ConvPReLu.forward for stride=1, padding=2, kernel=5."""
    N, Cin, H, W = x_nchw.shape
    Cout = weight_oihw.shape[0]
    K, P = KERNEL, PADDING
    assert K - 1 <= 2 * P, "window must stay inside the padded row"
    T = K * K
    Hp, Wp = H + 2 * P, W + 2 * P
    HWp = H * Wp                               # output row-flattened length
    # Flat length: enough for the largest tap window, rounded to 128 lanes.
    L = -(-(Hp * Wp + 2 * P) // 128) * 128

    # ---- glue: layout plumbing only (padding / flattening, no conv math) ----
    x = x_nchw.astype(jnp.float32)
    x_pad = jnp.pad(x, ((0, 0), (0, 0), (P, P), (P, P)))        # (N,Cin,Hp,Wp)
    x_flat = jnp.pad(x_pad.reshape(N, Cin, Hp * Wp),
                     ((0, 0), (0, 0), (0, L - Hp * Wp)))        # (N,Cin,L)
    # per-tap weights, Cout-major so the matmul output is (Cout, H*Wp)
    w_taps = jnp.transpose(weight_oihw, (2, 3, 0, 1)).reshape(T, Cout, Cin)
    w_taps = w_taps.astype(jnp.float32)
    b2 = bias.reshape(Cout, 1).astype(jnp.float32)
    a1 = jnp.asarray(alpha, jnp.float32).reshape(1)

    kernel = functools.partial(_conv_prelu_kernel,
                               kernel_size=K, w_padded=Wp)

    out_rows = pl.pallas_call(
        kernel,
        out_shape=jax.ShapeDtypeStruct((N, Cout, HWp), jnp.float32),
        grid=(N,),
        in_specs=[
            pl.BlockSpec((1, Cin, L), lambda n: (n, 0, 0)),       # image n
            pl.BlockSpec((T, Cout, Cin), lambda n: (0, 0, 0)),    # weights
            pl.BlockSpec((Cout, 1), lambda n: (0, 0)),            # bias
            pl.BlockSpec(memory_space=pltpu.MemorySpace.SMEM),    # alpha
        ],
        out_specs=pl.BlockSpec((1, Cout, HWp), lambda n: (n, 0, 0)),
        compiler_params=pltpu.CompilerParams(
            dimension_semantics=("parallel",),
            vmem_limit_bytes=32 * 1024 * 1024,
        ),
    )(x_flat, w_taps, b2, a1)

    # Rows are still at padded width Wp; crop back to W.  (N, Cout, H, W) —
    # already NCHW, no transpose needed.
    return out_rows.reshape(N, Cout, H, Wp)[:, :, :, :W]


if __name__ == "__main__":
    # Small shapes consistent with the module: batch=2, in_ch=4, out_ch=8, 16x16.
    N, Cin, Cout, H, W = 2, 4, 8, 16, 16

    key = jax.random.PRNGKey(0)
    kx, kw, kb = jax.random.split(key, 3)

    x = jax.random.normal(kx, (N, Cin, H, W), jnp.float32)

    # Deterministic parameter init mimicking PyTorch defaults:
    # Conv2d: U(-1/sqrt(fan_in), 1/sqrt(fan_in)); PReLU: alpha = 0.25.
    fan_in = Cin * KERNEL * KERNEL
    bound = 1.0 / (fan_in ** 0.5)
    weight = jax.random.uniform(
        kw, (Cout, Cin, KERNEL, KERNEL), jnp.float32, -bound, bound
    )
    bias = jax.random.uniform(kb, (Cout,), jnp.float32, -bound, bound)
    alpha = jnp.asarray(0.25, jnp.float32)

    out = conv_prelu(x, weight, bias, alpha)
    out = jax.block_until_ready(out)

    # Pure-JAX reference (XLA conv) for correctness.
    ref = jax.lax.conv_general_dilated(
        x,
        weight,
        window_strides=(1, 1),
        padding=((PADDING, PADDING), (PADDING, PADDING)),
        dimension_numbers=("NCHW", "OIHW", "NCHW"),
    ) + bias.reshape(1, Cout, 1, 1)
    ref = jnp.where(ref > 0, ref, alpha * ref)

    assert out.shape == (N, Cout, H, W), out.shape
    assert out.dtype == jnp.float32
    assert jnp.allclose(out, ref, atol=1e-4, rtol=1e-4), float(
        jnp.max(jnp.abs(out - ref))
    )
    print("KERNEL_OK")
</pallas_src>

<mosaic_0001>
module attributes {stable_mosaic.version = 11 : i64} {
  func.func @_conv_prelu_kernel(%arg0: i32, %arg1: memref<1x4x512xf32, #tpu.memory_space<vmem>>, %arg2: memref<25x8x4xf32, #tpu.memory_space<vmem>>, %arg3: memref<8x1xf32, #tpu.memory_space<vmem>>, %arg4: memref<1xf32, #tpu.memory_space<smem>>, %arg5: memref<1x8x320xf32, #tpu.memory_space<vmem>>) attributes {dimension_semantics = [#tpu.dimension_semantics<parallel>], iteration_bounds = array<i64: 2>, scalar_prefetch = 0 : i64, scratch_operands = 0 : i64, tpu.core_type = #tpu.core_type<tc>, window_params = [{transform_indices = @transform_0, window_bounds = array<i64: 1, 4, 512>}, {pipeline_mode = #tpu.pipeline_mode<synchronous>, transform_indices = @transform_1, window_bounds = array<i64: 25, 8, 4>}, {pipeline_mode = #tpu.pipeline_mode<synchronous>, transform_indices = @transform_2, window_bounds = array<i64: 8, 1>}, {transform_indices = @transform_3, window_bounds = array<i64: 1>}, {transform_indices = @transform_4, window_bounds = array<i64: 1, 8, 320>}]} {
    %c0 = arith.constant 0 : index
    %c0_0 = arith.constant 0 : index
    %c0_1 = arith.constant 0 : index
    %0 = vector.load %arg1[%c0, %c0_0, %c0_1] : memref<1x4x512xf32, #tpu.memory_space<vmem>>, vector<1x4x512xf32>
    %1 = vector.shape_cast %0 : vector<1x4x512xf32> to vector<4x512xf32>
    %cst = arith.constant 0.000000e+00 : f32
    %2 = vector.broadcast %cst : f32 to vector<8x320xf32>
    %3 = vector.extract_strided_slice %1 {offsets = [0, 0], sizes = [4, 320], strides = [1, 1]} : vector<4x512xf32> to vector<4x320xf32>
    %c0_2 = arith.constant 0 : index
    %c0_3 = arith.constant 0 : index
    %c0_4 = arith.constant 0 : index
    %4 = vector.load %arg2[%c0_2, %c0_3, %c0_4] : memref<25x8x4xf32, #tpu.memory_space<vmem>>, vector<1x8x4xf32>
    %5 = vector.shape_cast %4 : vector<1x8x4xf32> to vector<8x4xf32>
    %cst_5 = arith.constant dense<0.000000e+00> : vector<8x320xf32>
    %6 = tpu.matmul %5, %3, %cst_5 {dimension_numbers = #tpu.dot_dimension_numbers<[1], [0], [0], [1], [0, 0, 1, 1], [], []>} : vector<8x4xf32>, vector<4x320xf32>, vector<8x320xf32> -> vector<8x320xf32>
    %7 = arith.addf %2, %6 : vector<8x320xf32>
    %8 = vector.extract_strided_slice %1 {offsets = [0, 1], sizes = [4, 320], strides = [1, 1]} : vector<4x512xf32> to vector<4x320xf32>
    %c1 = arith.constant 1 : index
    %c0_6 = arith.constant 0 : index
    %c0_7 = arith.constant 0 : index
    %9 = vector.load %arg2[%c1, %c0_6, %c0_7] : memref<25x8x4xf32, #tpu.memory_space<vmem>>, vector<1x8x4xf32>
    %10 = vector.shape_cast %9 : vector<1x8x4xf32> to vector<8x4xf32>
    %cst_8 = arith.constant dense<0.000000e+00> : vector<8x320xf32>
    %11 = tpu.matmul %10, %8, %cst_8 {dimension_numbers = #tpu.dot_dimension_numbers<[1], [0], [0], [1], [0, 0, 1, 1], [], []>} : vector<8x4xf32>, vector<4x320xf32>, vector<8x320xf32> -> vector<8x320xf32>
    %12 = arith.addf %7, %11 : vector<8x320xf32>
    %13 = vector.extract_strided_slice %1 {offsets = [0, 2], sizes = [4, 320], strides = [1, 1]} : vector<4x512xf32> to vector<4x320xf32>
    %c2 = arith.constant 2 : index
    %c0_9 = arith.constant 0 : index
    %c0_10 = arith.constant 0 : index
    %14 = vector.load %arg2[%c2, %c0_9, %c0_10] : memref<25x8x4xf32, #tpu.memory_space<vmem>>, vector<1x8x4xf32>
    %15 = vector.shape_cast %14 : vector<1x8x4xf32> to vector<8x4xf32>
    %cst_11 = arith.constant dense<0.000000e+00> : vector<8x320xf32>
    %16 = tpu.matmul %15, %13, %cst_11 {dimension_numbers = #tpu.dot_dimension_numbers<[1], [0], [0], [1], [0, 0, 1, 1], [], []>} : vector<8x4xf32>, vector<4x320xf32>, vector<8x320xf32> -> vector<8x320xf32>
    %17 = arith.addf %12, %16 : vector<8x320xf32>
    %18 = vector.extract_strided_slice %1 {offsets = [0, 3], sizes = [4, 320], strides = [1, 1]} : vector<4x512xf32> to vector<4x320xf32>
    %c3 = arith.constant 3 : index
    %c0_12 = arith.constant 0 : index
    %c0_13 = arith.constant 0 : index
    %19 = vector.load %arg2[%c3, %c0_12, %c0_13] : memref<25x8x4xf32, #tpu.memory_space<vmem>>, vector<1x8x4xf32>
    %20 = vector.shape_cast %19 : vector<1x8x4xf32> to vector<8x4xf32>
    %cst_14 = arith.constant dense<0.000000e+00> : vector<8x320xf32>
    %21 = tpu.matmul %20, %18, %cst_14 {dimension_numbers = #tpu.dot_dimension_numbers<[1], [0], [0], [1], [0, 0, 1, 1], [], []>} : vector<8x4xf32>, vector<4x320xf32>, vector<8x320xf32> -> vector<8x320xf32>
    %22 = arith.addf %17, %21 : vector<8x320xf32>
    %23 = vector.extract_strided_slice %1 {offsets = [0, 4], sizes = [4, 320], strides = [1, 1]} : vector<4x512xf32> to vector<4x320xf32>
    %c4 = arith.constant 4 : index
    %c0_15 = arith.constant 0 : index
    %c0_16 = arith.constant 0 : index
    %24 = vector.load %arg2[%c4, %c0_15, %c0_16] : memref<25x8x4xf32, #tpu.memory_space<vmem>>, vector<1x8x4xf32>
    %25 = vector.shape_cast %24 : vector<1x8x4xf32> to vector<8x4xf32>
    %cst_17 = arith.constant dense<0.000000e+00> : vector<8x320xf32>
    %26 = tpu.matmul %25, %23, %cst_17 {dimension_numbers = #tpu.dot_dimension_numbers<[1], [0], [0], [1], [0, 0, 1, 1], [], []>} : vector<8x4xf32>, vector<4x320xf32>, vector<8x320xf32> -> vector<8x320xf32>
    %27 = arith.addf %22, %26 : vector<8x320xf32>
    %28 = vector.extract_strided_slice %1 {offsets = [0, 20], sizes = [4, 320], strides = [1, 1]} : vector<4x512xf32> to vector<4x320xf32>
    %c5 = arith.constant 5 : index
    %c0_18 = arith.constant 0 : index
    %c0_19 = arith.constant 0 : index
    %29 = vector.load %arg2[%c5, %c0_18, %c0_19] : memref<25x8x4xf32, #tpu.memory_space<vmem>>, vector<1x8x4xf32>
    %30 = vector.shape_cast %29 : vector<1x8x4xf32> to vector<8x4xf32>
    %cst_20 = arith.constant dense<0.000000e+00> : vector<8x320xf32>
    %31 = tpu.matmul %30, %28, %cst_20 {dimension_numbers = #tpu.dot_dimension_numbers<[1], [0], [0], [1], [0, 0, 1, 1], [], []>} : vector<8x4xf32>, vector<4x320xf32>, vector<8x320xf32> -> vector<8x320xf32>
    %32 = arith.addf %27, %31 : vector<8x320xf32>
    %33 = vector.extract_strided_slice %1 {offsets = [0, 21], sizes = [4, 320], strides = [1, 1]} : vector<4x512xf32> to vector<4x320xf32>
    %c6 = arith.constant 6 : index
    %c0_21 = arith.constant 0 : index
    %c0_22 = arith.constant 0 : index
    %34 = vector.load %arg2[%c6, %c0_21, %c0_22] : memref<25x8x4xf32, #tpu.memory_space<vmem>>, vector<1x8x4xf32>
    %35 = vector.shape_cast %34 : vector<1x8x4xf32> to vector<8x4xf32>
    %cst_23 = arith.constant dense<0.000000e+00> : vector<8x320xf32>
    %36 = tpu.matmul %35, %33, %cst_23 {dimension_numbers = #tpu.dot_dimension_numbers<[1], [0], [0], [1], [0, 0, 1, 1], [], []>} : vector<8x4xf32>, vector<4x320xf32>, vector<8x320xf32> -> vector<8x320xf32>
    %37 = arith.addf %32, %36 : vector<8x320xf32>
    %38 = vector.extract_strided_slice %1 {offsets = [0, 22], sizes = [4, 320], strides = [1, 1]} : vector<4x512xf32> to vector<4x320xf32>
    %c7 = arith.constant 7 : index
    %c0_24 = arith.constant 0 : index
    %c0_25 = arith.constant 0 : index
    %39 = vector.load %arg2[%c7, %c0_24, %c0_25] : memref<25x8x4xf32, #tpu.memory_space<vmem>>, vector<1x8x4xf32>
    %40 = vector.shape_cast %39 : vector<1x8x4xf32> to vector<8x4xf32>
    %cst_26 = arith.constant dense<0.000000e+00> : vector<8x320xf32>
    %41 = tpu.matmul %40, %38, %cst_26 {dimension_numbers = #tpu.dot_dimension_numbers<[1], [0], [0], [1], [0, 0, 1, 1], [], []>} : vector<8x4xf32>, vector<4x320xf32>, vector<8x320xf32> -> vector<8x320xf32>
    %42 = arith.addf %37, %41 : vector<8x320xf32>
    %43 = vector.extract_strided_slice %1 {offsets = [0, 23], sizes = [4, 320], strides = [1, 1]} : vector<4x512xf32> to vector<4x320xf32>
    %c8 = arith.constant 8 : index
    %c0_27 = arith.constant 0 : index
    %c0_28 = arith.constant 0 : index
    %44 = vector.load %arg2[%c8, %c0_27, %c0_28] : memref<25x8x4xf32, #tpu.memory_space<vmem>>, vector<1x8x4xf32>
    %45 = vector.shape_cast %44 : vector<1x8x4xf32> to vector<8x4xf32>
    %cst_29 = arith.constant dense<0.000000e+00> : vector<8x320xf32>
    %46 = tpu.matmul %45, %43, %cst_29 {dimension_numbers = #tpu.dot_dimension_numbers<[1], [0], [0], [1], [0, 0, 1, 1], [], []>} : vector<8x4xf32>, vector<4x320xf32>, vector<8x320xf32> -> vector<8x320xf32>
    %47 = arith.addf %42, %46 : vector<8x320xf32>
    %48 = vector.extract_strided_slice %1 {offsets = [0, 24], sizes = [4, 320], strides = [1, 1]} : vector<4x512xf32> to vector<4x320xf32>
    %c9 = arith.constant 9 : index
    %c0_30 = arith.constant 0 : index
    %c0_31 = arith.constant 0 : index
    %49 = vector.load %arg2[%c9, %c0_30, %c0_31] : memref<25x8x4xf32, #tpu.memory_space<vmem>>, vector<1x8x4xf32>
    %50 = vector.shape_cast %49 : vector<1x8x4xf32> to vector<8x4xf32>
    %cst_32 = arith.constant dense<0.000000e+00> : vector<8x320xf32>
    %51 = tpu.matmul %50, %48, %cst_32 {dimension_numbers = #tpu.dot_dimension_numbers<[1], [0], [0], [1], [0, 0, 1, 1], [], []>} : vector<8x4xf32>, vector<4x320xf32>, vector<8x320xf32> -> vector<8x320xf32>
    %52 = arith.addf %47, %51 : vector<8x320xf32>
    %53 = vector.extract_strided_slice %1 {offsets = [0, 40], sizes = [4, 320], strides = [1, 1]} : vector<4x512xf32> to vector<4x320xf32>
    %c10 = arith.constant 10 : index
    %c0_33 = arith.constant 0 : index
    %c0_34 = arith.constant 0 : index
    %54 = vector.load %arg2[%c10, %c0_33, %c0_34] : memref<25x8x4xf32, #tpu.memory_space<vmem>>, vector<1x8x4xf32>
    %55 = vector.shape_cast %54 : vector<1x8x4xf32> to vector<8x4xf32>
    %cst_35 = arith.constant dense<0.000000e+00> : vector<8x320xf32>
    %56 = tpu.matmul %55, %53, %cst_35 {dimension_numbers = #tpu.dot_dimension_numbers<[1], [0], [0], [1], [0, 0, 1, 1], [], []>} : vector<8x4xf32>, vector<4x320xf32>, vector<8x320xf32> -> vector<8x320xf32>
    %57 = arith.addf %52, %56 : vector<8x320xf32>
    %58 = vector.extract_strided_slice %1 {offsets = [0, 41], sizes = [4, 320], strides = [1, 1]} : vector<4x512xf32> to vector<4x320xf32>
    %c11 = arith.constant 11 : index
    %c0_36 = arith.constant 0 : index
    %c0_37 = arith.constant 0 : index
    %59 = vector.load %arg2[%c11, %c0_36, %c0_37] : memref<25x8x4xf32, #tpu.memory_space<vmem>>, vector<1x8x4xf32>
    %60 = vector.shape_cast %59 : vector<1x8x4xf32> to vector<8x4xf32>
    %cst_38 = arith.constant dense<0.000000e+00> : vector<8x320xf32>
    %61 = tpu.matmul %60, %58, %cst_38 {dimension_numbers = #tpu.dot_dimension_numbers<[1], [0], [0], [1], [0, 0, 1, 1], [], []>} : vector<8x4xf32>, vector<4x320xf32>, vector<8x320xf32> -> vector<8x320xf32>
    %62 = arith.addf %57, %61 : vector<8x320xf32>
    %63 = vector.extract_strided_slice %1 {offsets = [0, 42], sizes = [4, 320], strides = [1, 1]} : vector<4x512xf32> to vector<4x320xf32>
    %c12 = arith.constant 12 : index
    %c0_39 = arith.constant 0 : index
    %c0_40 = arith.constant 0 : index
    %64 = vector.load %arg2[%c12, %c0_39, %c0_40] : memref<25x8x4xf32, #tpu.memory_space<vmem>>, vector<1x8x4xf32>
    %65 = vector.shape_cast %64 : vector<1x8x4xf32> to vector<8x4xf32>
    %cst_41 = arith.constant dense<0.000000e+00> : vector<8x320xf32>
    %66 = tpu.matmul %65, %63, %cst_41 {dimension_numbers = #tpu.dot_dimension_numbers<[1], [0], [0], [1], [0, 0, 1, 1], [], []>} : vector<8x4xf32>, vector<4x320xf32>, vector<8x320xf32> -> vector<8x320xf32>
    %67 = arith.addf %62, %66 : vector<8x320xf32>
    %68 = vector.extract_strided_slice %1 {offsets = [0, 43], sizes = [4, 320], strides = [1, 1]} : vector<4x512xf32> to vector<4x320xf32>
    %c13 = arith.constant 13 : index
    %c0_42 = arith.constant 0 : index
    %c0_43 = arith.constant 0 : index
    %69 = vector.load %arg2[%c13, %c0_42, %c0_43] : memref<25x8x4xf32, #tpu.memory_space<vmem>>, vector<1x8x4xf32>
    %70 = vector.shape_cast %69 : vector<1x8x4xf32> to vector<8x4xf32>
    %cst_44 = arith.constant dense<0.000000e+00> : vector<8x320xf32>
    %71 = tpu.matmul %70, %68, %cst_44 {dimension_numbers = #tpu.dot_dimension_numbers<[1], [0], [0], [1], [0, 0, 1, 1], [], []>} : vector<8x4xf32>, vector<4x320xf32>, vector<8x320xf32> -> vector<8x320xf32>
    %72 = arith.addf %67, %71 : vector<8x320xf32>
    %73 = vector.extract_strided_slice %1 {offsets = [0, 44], sizes = [4, 320], strides = [1, 1]} : vector<4x512xf32> to vector<4x320xf32>
    %c14 = arith.constant 14 : index
    %c0_45 = arith.constant 0 : index
    %c0_46 = arith.constant 0 : index
    %74 = vector.load %arg2[%c14, %c0_45, %c0_46] : memref<25x8x4xf32, #tpu.memory_space<vmem>>, vector<1x8x4xf32>
    %75 = vector.shape_cast %74 : vector<1x8x4xf32> to vector<8x4xf32>
    %cst_47 = arith.constant dense<0.000000e+00> : vector<8x320xf32>
    %76 = tpu.matmul %75, %73, %cst_47 {dimension_numbers = #tpu.dot_dimension_numbers<[1], [0], [0], [1], [0, 0, 1, 1], [], []>} : vector<8x4xf32>, vector<4x320xf32>, vector<8x320xf32> -> vector<8x320xf32>
    %77 = arith.addf %72, %76 : vector<8x320xf32>
    %78 = vector.extract_strided_slice %1 {offsets = [0, 60], sizes = [4, 320], strides = [1, 1]} : vector<4x512xf32> to vector<4x320xf32>
    %c15 = arith.constant 15 : index
    %c0_48 = arith.constant 0 : index
    %c0_49 = arith.constant 0 : index
    %79 = vector.load %arg2[%c15, %c0_48, %c0_49] : memref<25x8x4xf32, #tpu.memory_space<vmem>>, vector<1x8x4xf32>
    %80 = vector.shape_cast %79 : vector<1x8x4xf32> to vector<8x4xf32>
    %cst_50 = arith.constant dense<0.000000e+00> : vector<8x320xf32>
    %81 = tpu.matmul %80, %78, %cst_50 {dimension_numbers = #tpu.dot_dimension_numbers<[1], [0], [0], [1], [0, 0, 1, 1], [], []>} : vector<8x4xf32>, vector<4x320xf32>, vector<8x320xf32> -> vector<8x320xf32>
    %82 = arith.addf %77, %81 : vector<8x320xf32>
    %83 = vector.extract_strided_slice %1 {offsets = [0, 61], sizes = [4, 320], strides = [1, 1]} : vector<4x512xf32> to vector<4x320xf32>
    %c16 = arith.constant 16 : index
    %c0_51 = arith.constant 0 : index
    %c0_52 = arith.constant 0 : index
    %84 = vector.load %arg2[%c16, %c0_51, %c0_52] : memref<25x8x4xf32, #tpu.memory_space<vmem>>, vector<1x8x4xf32>
    %85 = vector.shape_cast %84 : vector<1x8x4xf32> to vector<8x4xf32>
    %cst_53 = arith.constant dense<0.000000e+00> : vector<8x320xf32>
    %86 = tpu.matmul %85, %83, %cst_53 {dimension_numbers = #tpu.dot_dimension_numbers<[1], [0], [0], [1], [0, 0, 1, 1], [], []>} : vector<8x4xf32>, vector<4x320xf32>, vector<8x320xf32> -> vector<8x320xf32>
    %87 = arith.addf %82, %86 : vector<8x320xf32>
    %88 = vector.extract_strided_slice %1 {offsets = [0, 62], sizes = [4, 320], strides = [1, 1]} : vector<4x512xf32> to vector<4x320xf32>
    %c17 = arith.constant 17 : index
    %c0_54 = arith.constant 0 : index
    %c0_55 = arith.constant 0 : index
    %89 = vector.load %arg2[%c17, %c0_54, %c0_55] : memref<25x8x4xf32, #tpu.memory_space<vmem>>, vector<1x8x4xf32>
    %90 = vector.shape_cast %89 : vector<1x8x4xf32> to vector<8x4xf32>
    %cst_56 = arith.constant dense<0.000000e+00> : vector<8x320xf32>
    %91 = tpu.matmul %90, %88, %cst_56 {dimension_numbers = #tpu.dot_dimension_numbers<[1], [0], [0], [1], [0, 0, 1, 1], [], []>} : vector<8x4xf32>, vector<4x320xf32>, vector<8x320xf32> -> vector<8x320xf32>
    %92 = arith.addf %87, %91 : vector<8x320xf32>
    %93 = vector.extract_strided_slice %1 {offsets = [0, 63], sizes = [4, 320], strides = [1, 1]} : vector<4x512xf32> to vector<4x320xf32>
    %c18 = arith.constant 18 : index
    %c0_57 = arith.constant 0 : index
    %c0_58 = arith.constant 0 : index
    %94 = vector.load %arg2[%c18, %c0_57, %c0_58] : memref<25x8x4xf32, #tpu.memory_space<vmem>>, vector<1x8x4xf32>
    %95 = vector.shape_cast %94 : vector<1x8x4xf32> to vector<8x4xf32>
    %cst_59 = arith.constant dense<0.000000e+00> : vector<8x320xf32>
    %96 = tpu.matmul %95, %93, %cst_59 {dimension_numbers = #tpu.dot_dimension_numbers<[1], [0], [0], [1], [0, 0, 1, 1], [], []>} : vector<8x4xf32>, vector<4x320xf32>, vector<8x320xf32> -> vector<8x320xf32>
    %97 = arith.addf %92, %96 : vector<8x320xf32>
    %98 = vector.extract_strided_slice %1 {offsets = [0, 64], sizes = [4, 320], strides = [1, 1]} : vector<4x512xf32> to vector<4x320xf32>
    %c19 = arith.constant 19 : index
    %c0_60 = arith.constant 0 : index
    %c0_61 = arith.constant 0 : index
    %99 = vector.load %arg2[%c19, %c0_60, %c0_61] : memref<25x8x4xf32, #tpu.memory_space<vmem>>, vector<1x8x4xf32>
    %100 = vector.shape_cast %99 : vector<1x8x4xf32> to vector<8x4xf32>
    %cst_62 = arith.constant dense<0.000000e+00> : vector<8x320xf32>
    %101 = tpu.matmul %100, %98, %cst_62 {dimension_numbers = #tpu.dot_dimension_numbers<[1], [0], [0], [1], [0, 0, 1, 1], [], []>} : vector<8x4xf32>, vector<4x320xf32>, vector<8x320xf32> -> vector<8x320xf32>
    %102 = arith.addf %97, %101 : vector<8x320xf32>
    %103 = vector.extract_strided_slice %1 {offsets = [0, 80], sizes = [4, 320], strides = [1, 1]} : vector<4x512xf32> to vector<4x320xf32>
    %c20 = arith.constant 20 : index
    %c0_63 = arith.constant 0 : index
    %c0_64 = arith.constant 0 : index
    %104 = vector.load %arg2[%c20, %c0_63, %c0_64] : memref<25x8x4xf32, #tpu.memory_space<vmem>>, vector<1x8x4xf32>
    %105 = vector.shape_cast %104 : vector<1x8x4xf32> to vector<8x4xf32>
    %cst_65 = arith.constant dense<0.000000e+00> : vector<8x320xf32>
    %106 = tpu.matmul %105, %103, %cst_65 {dimension_numbers = #tpu.dot_dimension_numbers<[1], [0], [0], [1], [0, 0, 1, 1], [], []>} : vector<8x4xf32>, vector<4x320xf32>, vector<8x320xf32> -> vector<8x320xf32>
    %107 = arith.addf %102, %106 : vector<8x320xf32>
    %108 = vector.extract_strided_slice %1 {offsets = [0, 81], sizes = [4, 320], strides = [1, 1]} : vector<4x512xf32> to vector<4x320xf32>
    %c21 = arith.constant 21 : index
    %c0_66 = arith.constant 0 : index
    %c0_67 = arith.constant 0 : index
    %109 = vector.load %arg2[%c21, %c0_66, %c0_67] : memref<25x8x4xf32, #tpu.memory_space<vmem>>, vector<1x8x4xf32>
    %110 = vector.shape_cast %109 : vector<1x8x4xf32> to vector<8x4xf32>
    %cst_68 = arith.constant dense<0.000000e+00> : vector<8x320xf32>
    %111 = tpu.matmul %110, %108, %cst_68 {dimension_numbers = #tpu.dot_dimension_numbers<[1], [0], [0], [1], [0, 0, 1, 1], [], []>} : vector<8x4xf32>, vector<4x320xf32>, vector<8x320xf32> -> vector<8x320xf32>
    %112 = arith.addf %107, %111 : vector<8x320xf32>
    %113 = vector.extract_strided_slice %1 {offsets = [0, 82], sizes = [4, 320], strides = [1, 1]} : vector<4x512xf32> to vector<4x320xf32>
    %c22 = arith.constant 22 : index
    %c0_69 = arith.constant 0 : index
    %c0_70 = arith.constant 0 : index
    %114 = vector.load %arg2[%c22, %c0_69, %c0_70] : memref<25x8x4xf32, #tpu.memory_space<vmem>>, vector<1x8x4xf32>
    %115 = vector.shape_cast %114 : vector<1x8x4xf32> to vector<8x4xf32>
    %cst_71 = arith.constant dense<0.000000e+00> : vector<8x320xf32>
    %116 = tpu.matmul %115, %113, %cst_71 {dimension_numbers = #tpu.dot_dimension_numbers<[1], [0], [0], [1], [0, 0, 1, 1], [], []>} : vector<8x4xf32>, vector<4x320xf32>, vector<8x320xf32> -> vector<8x320xf32>
    %117 = arith.addf %112, %116 : vector<8x320xf32>
    %118 = vector.extract_strided_slice %1 {offsets = [0, 83], sizes = [4, 320], strides = [1, 1]} : vector<4x512xf32> to vector<4x320xf32>
    %c23 = arith.constant 23 : index
    %c0_72 = arith.constant 0 : index
    %c0_73 = arith.constant 0 : index
    %119 = vector.load %arg2[%c23, %c0_72, %c0_73] : memref<25x8x4xf32, #tpu.memory_space<vmem>>, vector<1x8x4xf32>
    %120 = vector.shape_cast %119 : vector<1x8x4xf32> to vector<8x4xf32>
    %cst_74 = arith.constant dense<0.000000e+00> : vector<8x320xf32>
    %121 = tpu.matmul %120, %118, %cst_74 {dimension_numbers = #tpu.dot_dimension_numbers<[1], [0], [0], [1], [0, 0, 1, 1], [], []>} : vector<8x4xf32>, vector<4x320xf32>, vector<8x320xf32> -> vector<8x320xf32>
    %122 = arith.addf %117, %121 : vector<8x320xf32>
    %123 = vector.extract_strided_slice %1 {offsets = [0, 84], sizes = [4, 320], strides = [1, 1]} : vector<4x512xf32> to vector<4x320xf32>
    %c24 = arith.constant 24 : index
    %c0_75 = arith.constant 0 : index
    %c0_76 = arith.constant 0 : index
    %124 = vector.load %arg2[%c24, %c0_75, %c0_76] : memref<25x8x4xf32, #tpu.memory_space<vmem>>, vector<1x8x4xf32>
    %125 = vector.shape_cast %124 : vector<1x8x4xf32> to vector<8x4xf32>
    %cst_77 = arith.constant dense<0.000000e+00> : vector<8x320xf32>
    %126 = tpu.matmul %125, %123, %cst_77 {dimension_numbers = #tpu.dot_dimension_numbers<[1], [0], [0], [1], [0, 0, 1, 1], [], []>} : vector<8x4xf32>, vector<4x320xf32>, vector<8x320xf32> -> vector<8x320xf32>
    %127 = arith.addf %122, %126 : vector<8x320xf32>
    %c0_78 = arith.constant 0 : index
    %c0_79 = arith.constant 0 : index
    %128 = vector.load %arg3[%c0_78, %c0_79] : memref<8x1xf32, #tpu.memory_space<vmem>>, vector<8x1xf32>
    %129 = vector.broadcast %128 : vector<8x1xf32> to vector<8x320xf32>
    %130 = arith.addf %127, %129 : vector<8x320xf32>
    %c0_80 = arith.constant 0 : index
    %131 = memref.load %arg4[%c0_80] : memref<1xf32, #tpu.memory_space<smem>>
    %cst_81 = arith.constant 0.000000e+00 : f32
    %132 = vector.broadcast %cst_81 : f32 to vector<8x320xf32>
    %133 = arith.cmpf ogt, %130, %132 : vector<8x320xf32>
    %134 = vector.broadcast %131 : f32 to vector<8x320xf32>
    %135 = arith.mulf %134, %130 : vector<8x320xf32>
    %136 = arith.select %133, %130, %135 : vector<8x320xi1>, vector<8x320xf32>
    %c0_82 = arith.constant 0 : index
    %c0_83 = arith.constant 0 : index
    %c0_84 = arith.constant 0 : index
    %137 = vector.load %arg5[%c0_82, %c0_83, %c0_84] : memref<1x8x320xf32, #tpu.memory_space<vmem>>, vector<1x8x320xf32>
    %138 = vector.shape_cast %137 : vector<1x8x320xf32> to vector<8x320xf32>
    %139 = vector.shape_cast %136 : vector<8x320xf32> to vector<1x8x320xf32>
    tpu.vector_store %arg5[%c0_82, %c0_83, %c0_84], %139 {strides = array<i32>} : memref<1x8x320xf32, #tpu.memory_space<vmem>>, vector<1x8x320xf32>,
    return
  }
  func.func @transform_0(%arg0: i32) -> (i32, i32, i32) {
    %c0_i32 = arith.constant 0 : i32
    %c0_i32_0 = arith.constant 0 : i32
    %c0_i32_1 = arith.constant 0 : i32
    return %arg0, %c0_i32, %c0_i32_0 : i32, i32, i32
  }
  func.func @transform_1(%arg0: i32) -> (i32, i32, i32) {
    %c0_i32 = arith.constant 0 : i32
    %c0_i32_0 = arith.constant 0 : i32
    %c0_i32_1 = arith.constant 0 : i32
    %c0_i32_2 = arith.constant 0 : i32
    return %c0_i32, %c0_i32_0, %c0_i32_1 : i32, i32, i32
  }
  func.func @transform_2(%arg0: i32) -> (i32, i32) {
    %c0_i32 = arith.constant 0 : i32
    %c0_i32_0 = arith.constant 0 : i32
    %c0_i32_1 = arith.constant 0 : i32
    return %c0_i32, %c0_i32_0 : i32, i32
  }
  func.func @transform_3(%arg0: i32) -> i32 {
    %c0_i32 = arith.constant 0 : i32
    %c0_i32_0 = arith.constant 0 : i32
    return %c0_i32 : i32
  }
  func.func @transform_4(%arg0: i32) -> (i32, i32, i32) {
    %c0_i32 = arith.constant 0 : i32
    %c0_i32_0 = arith.constant 0 : i32
    %c0_i32_1 = arith.constant 0 : i32
    return %arg0, %c0_i32, %c0_i32_0 : i32, i32, i32
  }
}

</mosaic_0001>

<bundles_post_ra>
// kernel: tpu_custom_call.1
= control target key start
LH: loop header
LB: loop body
LE: loop exit
PB: predicated region body
PF: predicated region fallthrough
CT: control target
= control target key end

     0   :  { %s5693_s0 = inlined_call_operand.vmem [shape: f32[2,4,512], index: 0, kind: input, shape index: {}]   ;;  %s5694_s1 = inlined_call_operand.vmem [shape: f32[25,8,4], index: 1, kind: input, shape index: {}]   ;;  %s5695_s2 = inlined_call_operand.vmem [shape: f32[8,1], index: 2, kind: input, shape index: {}]   ;;  %s5696_s3 = inlined_call_operand.<no memory space> [shape: f32[1], index: 3, kind: input, shape index: {}]   ;;  %s5697_s4 = inlined_call_operand.hbm [shape: f32[2,8,320], index: 4, kind: output, shape index: {}]  }
   0x1   :  { %9 = sst [smem:[#allocation2]] %s5696_s3 }
   0x2   :  { %10 = vsyncpa [#allocation4], 0 }
   0x3   :  { %12 = vsyncpa [#allocation4 + $0x1], 0  ;;  %s4975_s17 = smov 0   ;;  %s4977_s18 = smov 0  }
   0x4   :  { %s4979_s19 = smov 0   ;;  %s4981_s20 = smov 0  }
   0x5 LB: > { %s4996_s3 = sadd.s32 4294967295, %s4917_s20   ;;  %s4401_s21 = sadd.s32 4294967294, %s4917_s20   ;;  %s4917_s20 = sphi %s4981_s20, %s5703_s20   ;;  %s4913_s19 = sphi %s4979_s19, %s5702_s19   ;;  %s4909_s18 = sphi %s4977_s18, %s5701_s18   ;;  %s4905_s17 = sphi %s4975_s17, %s5700_s17  }
   0x6   : > { %s5000_s22 = sadd.s32 1, %s4917_s20   ;;  %s114_s23 = sadd.s32 1, %s4913_s19 }
   0x7   : > { %s111_s24 = ssub.s32 %s4917_s20, %s5000_s22  ;;  %p124_p0 = scmp.ne.s32.totalorder %s4913_s19, %s4909_s18 }
   0x8   : > { %p112_p1 = scmp.eq.s32.totalorder %s111_s24, 0  ;;  %p125_p2 = scmp.eq.s32.totalorder %s4996_s3, 1 }
   0x9   : > { %p130_p3 = scmp.ne.s32.totalorder %s4909_s18, %s4905_s17  ;;  %p131_p4 = scmp.eq.s32.totalorder %s4401_s21, 1 }
   0xa   : > { %s5011_s25 = scalar_select %p112_p1, %s4913_s19, %s114_s23  }
   0xb   : > { %p5013_p5 = por %p125_p2, %p124_p0  ;;  %p5017_p6 = por %p131_p4, %p130_p3 }
   0xc   : > { %p4404_p7 = scmp.ge.s32.totalorder %s4917_s20, 1  ;;  %p166_p8 = scmp.lt.s32.totalorder %s4917_s20, 3 }
   0xe   : > { %p167_p9 = pnand %p4404_p7, %p166_p8 }
   0xf   : > { %p192_p10 = scmp.lt.s32.totalorder (!%p167_p9), %s4996_s3, 1  ;;  %v4919_v0 = vmov (!%p167_p9), 0.0   ;;  %vm4920_vm0 = vmmov (!%p167_p9), 0   ;;  %s4921_s7 = smov (!%p167_p9), 127   ;;  %vm218_vm1 = vcmask (!%p167_p9), 1043456   ;;  %vm211_vm2 = vcmask (!%p167_p9), 1039360  }
  0x10   : > { %170 = sbr.rel (%p167_p9) target bundleno = 576 (0x240), region = 36  ;;  %4610 = vmatprep.subr.mxu1 (!%p167_p9), %v4919_v0  ;;  %289 = vmatprep.mubr.f32.mxu0 (!%p167_p9), %v4919_v0  ;;  %s4922_s8 = smov (!%p167_p9), 126   ;;  %v4407_v9 = vld [vmem:[%s5694_s1 + $0x8] sm:$0xff] (!%p167_p9)  ;;  %vm214_vm3 = vcmask (!%p167_p9), 31744   ;;  %vm524_vm4 = vcmask (!%p167_p9), 1031168   ;;  %vm688_vm5 = vcmask (!%p167_p9), 1022976  }
  0x11   : > { %4612 = vmatprep.mubr.msk.f32.mxu1 (!%p167_p9), %vm4920_vm0, %v4919_v0  ;;  %s4923_s9 = smov (!%p167_p9), 125   ;;  %s4924_s10 = smov (!%p167_p9), 124   ;;  %v199_v17 = vld [vmem:[%s5694_s1] sm:$0xff] (!%p167_p9)  ;;  %v4418_v23 = vld [vmem:[%s5694_s1 + $0x10] sm:$0xff] (!%p167_p9)  ;;  %vm852_vm6 = vcmask (!%p167_p9), 1014784   ;;  %v4424_v27 = vld [vmem:[%s5694_s1 + $0x18] sm:$0xff] (!%p167_p9) }
  0x12   : > { %s4925_s11 = smov (!%p167_p9), 108   ;;  %s4926_s12 = smov (!%p167_p9), 107   ;;  %v4430_v31 = vld [vmem:[%s5694_s1 + $0x20] sm:$0xff] (!%p167_p9)  ;;  %vm1016_vm7 = vcmask (!%p167_p9), 883712   ;;  %v4436_v36 = vld [vmem:[%s5694_s1 + $0x28] sm:$0xff] (!%p167_p9)  ;;  %vm1180_vm8 = vcmask (!%p167_p9), 875520  }
  0x13   : > { %s4927_s13 = smov (!%p167_p9), 106   ;;  %s4928_s14 = smov (!%p167_p9), 105   ;;  %v4442_v40 = vld [vmem:[%s5694_s1 + $0x30] sm:$0xff] (!%p167_p9)  ;;  %v4448_v45 = vld [vmem:[%s5694_s1 + $0x38] sm:$0xff] (!%p167_p9)  ;;  %vm1344_vm9 = vcmask (!%p167_p9), 867328   ;;  %v4454_v48 = vld [vmem:[%s5694_s1 + $0x40] sm:$0xff] (!%p167_p9) }
  0x14   : > { %s4929_s15 = smov (!%p167_p9), 104   ;;  %s4930_s16 = smov (!%p167_p9), 88   ;;  %v5246_v53 = vld [vmem:[%s5694_s1 + $0x48] sm:$0xff] (!%p167_p9)  ;;  %vm1508_vm10 = vcmask (!%p167_p9), 859136   ;;  %v5265_v61 = vld [vmem:[%s5694_s1 + $0x50] sm:$0xff] (!%p167_p9)  ;;  %vm1672_vm11 = vcmask (!%p167_p9), 850944  }
  0x15   : > { %s4931_s21 = smov (!%p167_p9), 87   ;;  %s4932_s23 = smov (!%p167_p9), 86   ;;  %vm1836_vm12 = vcmask (!%p167_p9), 719872   ;;  %vm2000_vm13 = vcmask (!%p167_p9), 711680   ;;  %vm2164_vm14 = vcmask (!%p167_p9), 703488   ;;  %vm2328_vm15 = vcmask (!%p167_p9), 695296  }
  0x16   : > { %s4933_s24 = smov (!%p167_p9), 85   ;;  %s4936_s30 = smov (!%p167_p9), 67  }
  0x17   : > { %s193_s28 = scalar_select %p192_p10, %s4996_s3, 1 }
  0x18   : > { %s4937_s5 = smov 66  }
  0x19   : > { %s4559_s29 = sshll.u32 %s193_s28, 4  ;;  %s4934_s28 = smov 84  }
  0x1a   : > { %s196_s6 = scalar_lea.vmem %s5693_s0, %s4559_s29  ;;  %s4935_s29 = smov 68  }
  0x1b   : > { %v5032_v1 = vld [vmem:[%s196_s6] sm:$0xff]  ;;  %v5040_v3 = vld [vmem:[%s196_s6 + $0x8] sm:$0xff]  ;;  %s4938_s6 = smov 65  }
  0x1c   : > { %205 = vrot.lane.b32.xlu1 %v5032_v1, %s4921_s7  ;;  %v5037_v2 = vcombine.high %v5032_v1, %v5032_v1  ;;  %v5108_v10 = vcombine.high %v5040_v3, %v5040_v3 }
  0x1e   : > { %207 = vrot.lane.b32.xlu0 %v5037_v2, %s4921_s7 }
  0x20   : > { %520 = vrot.lane.b32.xlu1 %v5037_v2, %s4922_s8 }
  0x22   : > { %209 = vrot.lane.b32.xlu0 %v5040_v3, %s4921_s7  ;;  %s4939_s7 = smov 64  }
  0x24   : > { %518 = vrot.lane.b32.xlu1 %v5032_v1, %s4922_s8 }
  0x26   : > { %522 = vrot.lane.b32.xlu0 %v5040_v3, %s4922_s8  ;;  %s4940_s8 = smov 48  }
  0x28   : > { %686 = vrot.lane.b32.xlu1 %v5040_v3, %s4923_s9 }
  0x2a   : > { %684 = vrot.lane.b32.xlu0 %v5037_v2, %s4923_s9 }
  0x2c   : > { %848 = vrot.lane.b32.xlu1 %v5037_v2, %s4924_s10 }
  0x2e   : > { %682 = vrot.lane.b32.xlu0 %v5032_v1, %s4923_s9  ;;  %s4941_s9 = smov 47  }
  0x30   : > { %846 = vrot.lane.b32.xlu1 %v5032_v1, %s4924_s10 }
  0x32   : > { %850 = vrot.lane.b32.xlu0 %v5040_v3, %s4924_s10 }
  0x34   : > { %1014 = vrot.lane.b32.xlu1 %v5040_v3, %s4925_s11 }
  0x36   : > { %1012 = vrot.lane.b32.xlu0 %v5037_v2, %s4925_s11 }
  0x38   : > { %1176 = vrot.lane.b32.xlu1 %v5037_v2, %s4926_s12 }
  0x3a   : > { %1010 = vrot.lane.b32.xlu0 %v5032_v1, %s4925_s11  ;;  %s4313_s11 = sld [smem:[#allocation2]] }
  0x3c   : > { %1174 = vrot.lane.b32.xlu1 %v5032_v1, %s4926_s12 }
  0x3e   : > { %1178 = vrot.lane.b32.xlu0 %v5040_v3, %s4926_s12  ;;  %s4942_s12 = smov 46  }
  0x40   : > { %1342 = vrot.lane.b32.xlu1 %v5040_v3, %s4927_s13 }
  0x42   : > { %1340 = vrot.lane.b32.xlu0 %v5037_v2, %s4927_s13 }
  0x44   : > { %1504 = vrot.lane.b32.xlu1 %v5037_v2, %s4928_s14 }
  0x46   : > { %1338 = vrot.lane.b32.xlu0 %v5032_v1, %s4927_s13 }
  0x48   : > { %1502 = vrot.lane.b32.xlu1 %v5032_v1, %s4928_s14 }
  0x4a   : > { %1506 = vrot.lane.b32.xlu0 %v5040_v3, %s4928_s14 }
  0x4c   : > { %1670 = vrot.lane.b32.xlu1 %v5040_v3, %s4929_s15 }
  0x4e   : > { %1668 = vrot.lane.b32.xlu0 %v5037_v2, %s4929_s15 }
  0x50   : > { %1832 = vrot.lane.b32.xlu1 %v5037_v2, %s4930_s16 }
  0x52   : > { %1666 = vrot.lane.b32.xlu0 %v5032_v1, %s4929_s15  ;;  %s4784_s15 = smul.u32 384, %s4996_s3 }
  0x54   : > { %1830 = vrot.lane.b32.xlu1 %v5032_v1, %s4930_s16 }
  0x56   : > { %1834 = vrot.lane.b32.xlu0 %v5040_v3, %s4930_s16 }
  0x58   : > { %1998 = vrot.lane.b32.xlu1 %v5040_v3, %s4931_s21 }
  0x5a   : > { %1996 = vrot.lane.b32.xlu0 %v5037_v2, %s4931_s21 }
  0x5c   : > { %2160 = vrot.lane.b32.xlu1 %v5037_v2, %s4932_s23 }
  0x5e   : > { %1994 = vrot.lane.b32.xlu0 %v5032_v1, %s4931_s21  ;;  %s4943_s21 = smov 45  }
  0x60   : > { %2158 = vrot.lane.b32.xlu1 %v5032_v1, %s4932_s23 }
  0x62   : > { %2162 = vrot.lane.b32.xlu0 %v5040_v3, %s4932_s23 }
  0x64   : > { %2326 = vrot.lane.b32.xlu1 %v5040_v3, %s4933_s24 }
  0x66   : > { %2324 = vrot.lane.b32.xlu0 %v5037_v2, %s4933_s24 }
  0x68   : > { %2488 = vrot.lane.b32.xlu1 %v5037_v2, %s4934_s28 }
  0x6a   : > { %2322 = vrot.lane.b32.xlu0 %v5032_v1, %s4933_s24  ;;  %s5651_s24 = scalar_lea.hbm %s5697_s4, %s4784_s15 }
  0x6c   : > { %2486 = vrot.lane.b32.xlu1 %v5032_v1, %s4934_s28 }
  0x6e   : > { %2490 = vrot.lane.b32.xlu0 %v5040_v3, %s4934_s28 }
  0x70   : > { %2654 = vrot.lane.b32.xlu1 %v5040_v3, %s4935_s29 }
  0x72   : > { %2652 = vrot.lane.b32.xlu0 %v5037_v2, %s4935_s29 }
  0x74   : > { %2816 = vrot.lane.b32.xlu1 %v5037_v2, %s4936_s30 }
  0x76   : > { %2650 = vrot.lane.b32.xlu0 %v5032_v1, %s4935_s29  ;;  %s4946_s29 = smov [#allocation3]  }
  0x78   : > { %2814 = vrot.lane.b32.xlu1 %v5032_v1, %s4936_s30 }
  0x7a   : > { %2818 = vrot.lane.b32.xlu0 %v5040_v3, %s4936_s30  ;;  %s4944_s30 = smov 44  }
  0x7c   : > { %2982 = vrot.lane.b32.xlu1 %v5040_v3, %s4937_s5 }
  0x7e   : > { %2980 = vrot.lane.b32.xlu0 %v5037_v2, %s4937_s5 }
  0x80   : > { %3144 = vrot.lane.b32.xlu1 %v5037_v2, %s4938_s6 }
  0x82   : > { %2978 = vrot.lane.b32.xlu0 %v5032_v1, %s4937_s5 }
  0x84   : > { %3142 = vrot.lane.b32.xlu1 %v5032_v1, %s4938_s6 }
  0x86   : > { %3146 = vrot.lane.b32.xlu0 %v5040_v3, %s4938_s6 }
  0x88   : > { %3310 = vrot.lane.b32.xlu1 %v5040_v3, %s4939_s7 }
  0x8a   : > { %3308 = vrot.lane.b32.xlu0 %v5037_v2, %s4939_s7 }
  0x8c   : > { %3473 = vrot.lane.b32.xlu1 %v5037_v2, %s4940_s8 }
  0x8e   : > { %3306 = vrot.lane.b32.xlu0 %v5032_v1, %s4939_s7  ;;  %v206_v4 = vpop.permute.xlu1 %205 }
  0x90   : > { %v208_v5 = vpop.permute.xlu0 %207  ;;  %3471 = vrot.lane.b32.xlu1 %v5032_v1, %s4940_s8 }
  0x91   : > { %v212_v11 = vsel %vm211_vm2, %v206_v4, %v208_v5 }
  0x92   : > { %3475 = vrot.lane.b32.xlu0 %v5040_v3, %s4940_s8  ;;  %v521_v6 = vpop.permute.xlu1 %520 }
  0x94   : > { %v210_v7 = vpop.permute.xlu0 %209  ;;  %3642 = vrot.lane.b32.xlu1 %v5040_v3, %s4941_s9 }
  0x95   : > { %4611 = vmatpush3.msk.msra.mxu1 %vm218_vm1, %v210_v7  ;;  %v213_v8 = vsel %vm211_vm2, %v208_v5, %v210_v7  ;;  %vm2492_vm2 = vcmask 687104  }
  0x96   : > { %3640 = vrot.lane.b32.xlu0 %v5037_v2, %s4941_s9  ;;  %4408 = vmatprep.subr.msk.mxu0 %vm218_vm1, %v213_v8  ;;  %v519_v12 = vpop.permute.xlu1 %518 }
  0x97   : > { %4409 = vmatpush1.msk.msra.mxu0 %vm218_vm1, %v212_v11  ;;  %4613 = vmatmul.mubr.msk.f32.vlgmr.msra.gmra.mrb[0].mxu1 %vm214_vm3, %v4407_v9  ;;  %v525_v18 = vsel %vm524_vm4, %v519_v12, %v521_v6  ;;  %v5313_v11 = vld [vmem:[%s5694_s1 + $0x68] sm:$0xff] }
  0x98   : > { %4410 = vmatmul.mubr.msk.f32.vlgmr.msra.gmra.mrb[0].mxu0 %vm214_vm3, %v4407_v9  ;;  %4413 = vmatprep.subr.msk.mxu0 %vm218_vm1, %v5037_v2  ;;  %v523_v13 = vpop.permute.xlu0 %522 }
  0x99   : > { %v526_v14 = vsel %vm524_vm4, %v521_v6, %v523_v13  ;;  %4414 = vmatpush1.msk.msra.mxu0 %vm218_vm1, %v5032_v1  ;;  %3477 = vrot.lane.b32.xlu1 %v5108_v10, %s4940_s8  ;;  %v5298_v6 = vld [vmem:[%s5694_s1 + $0x60] sm:$0xff]  ;;  %vm2656_vm4 = vcmask 556032  }
  0x9a   : > { %3638 = vrot.lane.b32.xlu0 %v5032_v1, %s4941_s9  ;;  %v687_v15 = vpop.permute.xlu1 %686  ;;  %4615 = vmatprep.subr.mxu1 %v4919_v0 }
  0x9b   : > { %4616 = vmatpush3.msk.msra.mxu1 %vm218_vm1, %v5040_v3  ;;  %4419 = vmatprep.subr.msk.mxu0 %vm218_vm1, %v526_v14 }
  0x9c   : > { %v685_v16 = vpop.permute.xlu0 %684  ;;  %4617 = vmatprep.mubr.msk.f32.mxu1 %vm4920_vm0, %v4919_v0  ;;  %4620 = vmatprep.subr.mxu1 %v4919_v0 }
  0x9d   : > { %3809 = vrot.lane.b32.xlu1 %v5040_v3, %s4942_s12  ;;  %439 = vmatprep.mubr.f32.mxu0 %v4919_v0  ;;  %v690_v20 = vsel %vm688_vm5, %v685_v16, %v687_v15 }
  0x9e   : > { %3807 = vrot.lane.b32.xlu0 %v5037_v2, %s4942_s12  ;;  %4618 = vmatmul.mubr.msk.f32.vlgmr.msra.gmra.mrb[2].mxu1 %vm214_vm3, %v199_v17  ;;  %v849_v19 = vpop.permute.xlu1 %848 }
  0x9f   : > { %4621 = vmatpush3.msk.msra.mxu1 %vm218_vm1, %v523_v13  ;;  %4622 = vmatprep.mubr.msk.f32.mxu1 %vm4920_vm0, %v4919_v0  ;;  %v4304_v13 = vld [vmem:[%s5695_s2] sm:$0xff] }
  0xa0   : > { %4415 = vmatmul.mubr.msk.f32.vlgmr.msra.gmra.mrb[0].mxu0 %vm214_vm3, %v199_v17  ;;  %v683_v21 = vpop.permute.xlu0 %682  ;;  %4625 = vmatprep.subr.mxu1 %v4919_v0 }
  0xa1   : > { %4420 = vmatpush1.msk.msra.mxu0 %vm218_vm1, %v525_v18  ;;  %3644 = vrot.lane.b32.xlu1 %v5108_v10, %s4941_s9  ;;  %v689_v25 = vsel %vm688_vm5, %v683_v21, %v685_v16  ;;  %v5342_v21 = vld [vmem:[%s5694_s1 + $0x70] sm:$0xff]  ;;  %vm2820_vm5 = vcmask 547840  }
  0xa2   : > { %3805 = vrot.lane.b32.xlu0 %v5032_v1, %s4942_s12  ;;  %v847_v22 = vpop.permute.xlu1 %846  ;;  %4425 = vmatprep.subr.msk.mxu0 %vm218_vm1, %v690_v20 }
  0xa3   : > { %600 = vmatprep.mubr.f32.mxu0 %v4919_v0  ;;  %4623 = vmatmul.mubr.msk.f32.vlgmr.msra.gmra.mrb[4].mxu1 %vm214_vm3, %v4418_v23  ;;  %v853_v33 = vsel %vm852_vm6, %v847_v22, %v849_v19 }
  0xa4   : > { %v851_v24 = vpop.permute.xlu0 %850  ;;  %4626 = vmatpush3.msk.msra.mxu1 %vm218_vm1, %v687_v15  ;;  %4627 = vmatprep.mubr.msk.f32.mxu1 %vm4920_vm0, %v4919_v0  ;;  %v4945_v15 = vmov 0  }
  0xa5   : > { %3974 = vrot.lane.b32.xlu1 %v5037_v2, %s4943_s21  ;;  %4630 = vmatprep.subr.mxu1 %v4919_v0  ;;  %v854_v28 = vsel %vm852_vm6, %v849_v19, %v851_v24  ;;  %vm3479_vm6 = vcmask 392192  }
  0xa6   : > { %3811 = vrot.lane.b32.xlu0 %v5108_v10, %s4942_s12  ;;  %v1015_v26 = vpop.permute.xlu1 %1014  ;;  %4851 = vset.pattern.permute.xlu1 %v4945_v15  ;;  %s189_s12 = sand.u32 1, %s4909_s18  }
  0xa7   : > { %4628 = vmatmul.mubr.msk.f32.vlgmr.msra.gmra.mrb[6].mxu1 %vm214_vm3, %v4424_v27  ;;  %4852 = vset.pattern.permute.xlu0 %v4945_v15  ;;  %s4783_s13 = smul.u32 24, %s189_s12  ;;  %s4328_s3 = scalar_lea.sflag [#allocation4], %s189_s12 }
  0xa8   : > { %4421 = vmatmul.mubr.msk.f32.vlgmr.msra.gmra.mrb[0].mxu0 %vm214_vm3, %v4418_v23  ;;  %v1013_v29 = vpop.permute.xlu0 %1012  ;;  %4631 = vmatpush3.msk.msra.mxu1 %vm218_vm1, %v851_v24  ;;  %v5362_v24 = vld [vmem:[%s5694_s1 + $0x78] sm:$0xff] }
  0xa9   : > { %4426 = vmatpush1.msk.msra.mxu0 %vm218_vm1, %v689_v25  ;;  %3972 = vrot.lane.b32.xlu1 %v5032_v1, %s4943_s21  ;;  %v1018_v35 = vsel %vm1016_vm7, %v1013_v29, %v1015_v26  ;;  %s191_s14 = scalar_lea.vmem [#allocation3], %s4783_s13 }
  0xaa   : > { %3976 = vrot.lane.b32.xlu0 %v5040_v3, %s4943_s21  ;;  %v1177_v30 = vpop.permute.xlu1 %1176  ;;  %4431 = vmatprep.subr.msk.mxu0 %vm218_vm1, %v854_v28  ;;  %s4342_s16 = sshll.u32 %s191_s14, 4  ;;  %s5653_s16 = int_to_ptr.vmem [resolvable:$true] %s4342_s16 }
  0xab   : > { %764 = vmatprep.mubr.f32.mxu0 %v4919_v0  ;;  %4632 = vmatprep.mubr.msk.f32.mxu1 %vm4920_vm0, %v4919_v0  ;;  %s4855_s28 = scalar_lea.vmem %s5653_s16, 384 }
  0xac   : > { %v1011_v32 = vpop.permute.xlu0 %1010  ;;  %4635 = vmatprep.subr.mxu1 %v4919_v0  ;;  %4633 = vmatmul.mubr.msk.f32.vlgmr.msra.gmra.mrb[8].mxu1 %vm214_vm3, %v4430_v31  ;;  %p4856_p11 = scmp.ne.s32.totalorder %s5653_s16, %s4855_s28 }
  0xad   : > { %4141 = vrot.lane.b32.xlu1 %v5037_v2, %s4944_s30  ;;  %4636 = vmatpush3.msk.msra.mxu1 %vm218_vm1, %v1015_v26  ;;  %v1017_v41 = vsel %vm1016_vm7, %v1011_v32, %v1013_v29  ;;  %v5282_v2 = vld [vmem:[%s5694_s1 + $0x58] sm:$0xff]  ;;  %vm2984_vm7 = vcmask 539648  }
  0xae   : > { %3978 = vrot.lane.b32.xlu0 %v5108_v10, %s4943_s21  ;;  %v1175_v34 = vpop.permute.xlu1 %1174  ;;  %4637 = vmatprep.mubr.msk.f32.mxu1 %vm4920_vm0, %v4919_v0  ;;  %p4857_p12 = pnand %p4856_p11, %p5013_p5 }
  0xaf   : > { %4640 = vmatprep.subr.mxu1 %v4919_v0  ;;  %v1181_v49 = vsel %vm1180_vm8, %v1175_v34, %v1177_v30 }
  0xb0   : > { %4427 = vmatmul.mubr.msk.f32.vlgmr.msra.gmra.mrb[0].mxu0 %vm214_vm3, %v4424_v27  ;;  %v1179_v37 = vpop.permute.xlu0 %1178  ;;  %4638 = vmatmul.mubr.msk.f32.vlgmr.msra.gmra.mrb[10].mxu1 %vm214_vm3, %v4436_v36  ;;  %p4858_p13 = pneg %p4857_p12 }
  0xb1   : > { %4432 = vmatpush1.msk.msra.mxu0 %vm218_vm1, %v853_v33  ;;  %4145 = vrot.lane.b32.xlu1 %v5108_v10, %s4944_s30  ;;  %v1182_v43 = vsel %vm1180_vm8, %v1177_v30, %v1179_v37  ;;  %v5385_v30 = vld [vmem:[%s5694_s1 + $0x80] sm:$0xff]  ;;  %vm3646_vm8 = vcmask 384000  }
  0xb2   : > { %4143 = vrot.lane.b32.xlu0 %v5040_v3, %s4944_s30  ;;  %v1343_v38 = vpop.permute.xlu1 %1342  ;;  %4437 = vmatprep.subr.msk.mxu0 %vm218_vm1, %v1018_v35  ;;  %v5405_v35 = vld [vmem:[%s5694_s1 + $0x88] sm:$0xff] }
  0xb3   : > { %928 = vmatprep.mubr.f32.mxu0 %v4919_v0  ;;  %4641 = vmatpush3.msk.msra.mxu1 %vm218_vm1, %v1179_v37 }
  0xb4   : > { %v1341_v39 = vpop.permute.xlu0 %1340  ;;  %4642 = vmatprep.mubr.msk.f32.mxu1 %vm4920_vm0, %v4919_v0  ;;  %4645 = vmatprep.subr.mxu1 %v4919_v0 }
  0xb5   : > { %4643 = vmatmul.mubr.msk.f32.vlgmr.msra.gmra.mrb[12].mxu1 %vm214_vm3, %v4442_v40  ;;  %v1346_v51 = vsel %vm1344_vm9, %v1341_v39, %v1343_v38  ;;  %4307 = vperm.xlu1 %4851, %v4304_v13  }
  0xb6   : > { %v1505_v42 = vpop.permute.xlu1 %1504  ;;  %4646 = vmatpush3.msk.msra.mxu1 %vm218_vm1, %v1343_v38  ;;  %4647 = vmatprep.mubr.msk.f32.mxu1 %vm4920_vm0, %v4919_v0 }
  0xb7   : > { %4650 = vmatprep.subr.mxu1 %v4919_v0  ;;  %4139 = vrot.lane.b32.xlu0 %v5032_v1, %s4944_s30  ;;  %s4859_s30 = sshll.u32 %s4946_s29, 4  ;;  %s4860_s30 = int_to_ptr.vmem [resolvable:$false] %s4859_s30 }
  0xb8   : > { %4433 = vmatmul.mubr.msk.f32.vlgmr.msra.gmra.mrb[0].mxu0 %vm214_vm3, %v4430_v31  ;;  %v1339_v44 = vpop.permute.xlu0 %1338  ;;  %s4861_s5 = scalar_lea.vmem %s4860_s30, 768  ;;  %p4862_p0 = scmp.lt.s32.totalorder %s5653_s16, %s4860_s30 }
  0xb9   : > { %4438 = vmatpush1.msk.msra.mxu0 %vm218_vm1, %v1017_v41  ;;  %1092 = vmatprep.mubr.f32.mxu0 %v4919_v0  ;;  %v1345_v56 = vsel %vm1344_vm9, %v1339_v44, %v1341_v39  ;;  %vm3148_vm9 = vcmask 531456   ;;  %p4863_p1 = scmp.lt.s32.totalorder %s4861_s5, %s4855_s28 }
  0xba   : > { %v1503_v46 = vpop.permute.xlu1 %1502  ;;  %4443 = vmatprep.subr.msk.mxu0 %vm218_vm1, %v1182_v43  ;;  %4648 = vmatmul.mubr.msk.f32.vlgmr.msra.gmra.mrb[14].mxu1 %vm214_vm3, %v4448_v45  ;;  %v5436_v43 = vld [vmem:[%s5694_s1 + $0x90] sm:$0xff] }
  0xbb   : > { %4652 = vmatprep.mubr.msk.f32.mxu1 %vm4920_vm0, %v4919_v0  ;;  %v1509_v63 = vsel %vm1508_vm10, %v1503_v46, %v1505_v42  ;;  %v5457_v46 = vld [vmem:[%s5694_s1 + $0x98] sm:$0xff]  ;;  %p4864_p2 = por %p4863_p1, %p4862_p0 }
  0xbc   : > { %v1507_v47 = vpop.permute.xlu0 %1506 }
  0xbd   : > { %4651 = vmatpush3.msk.msra.mxu1 %vm218_vm1, %v1507_v47  ;;  %v1510_v58 = vsel %vm1508_vm10, %v1505_v42, %v1507_v47  ;;  %vm3813_vm10 = vcmask 375808   ;;  %p4865_p3 = pnand %p4864_p2, %p4858_p13 }
  0xbe   : > { %v1671_v50 = vpop.permute.xlu1 %1670  ;;  %4655 = vmatprep.subr.mxu1 %v4919_v0  ;;  %4653 = vmatmul.mubr.msk.f32.vlgmr.msra.gmra.mrb[16].mxu1 %vm214_vm3, %v4454_v48 }
  0xbf   : > { %4656 = vmatpush3.msk.msra.mxu1 %vm218_vm1, %v1671_v50  ;;  %4657 = vmatprep.mubr.msk.f32.mxu1 %vm4920_vm0, %v4919_v0 }
  0xc0   : > { %4439 = vmatmul.mubr.msk.f32.vlgmr.msra.gmra.mrb[0].mxu0 %vm214_vm3, %v4436_v36  ;;  %v1669_v52 = vpop.permute.xlu0 %1668  ;;  %4660 = vmatprep.subr.mxu1 %v4919_v0 }
  0xc1   : > { %4444 = vmatpush1.msk.msra.mxu0 %vm218_vm1, %v1181_v49  ;;  %1256 = vmatprep.mubr.f32.mxu0 %v4919_v0  ;;  %v1674_v3 = vsel %vm1672_vm11, %v1669_v52, %v1671_v50 }
  0xc2   : > { %v5248_v54 = vpop.permute.xlu1 %1832  ;;  %4449 = vmatprep.subr.msk.mxu0 %vm218_vm1, %v1346_v51  ;;  %4658 = vmatmul.mubr.msk.f32.vlgmr.msra.gmra.mrb[18].mxu1 %vm214_vm3, %v5246_v53 }
  0xc3   : > { %4662 = vmatprep.mubr.msk.f32.mxu1 %vm4920_vm0, %v4919_v0 }
  0xc4   : > { %v1667_v55 = vpop.permute.xlu0 %1666 }
  0xc5   : > { %v1673_v8 = vsel %vm1672_vm11, %v1667_v55, %v1669_v52  ;;  %vm3312_vm11 = vcmask 523264  }
  0xc6   : > { %v1831_v57 = vpop.permute.xlu1 %1830 }
  0xc7   : > { %v1837_v17 = vsel %vm1836_vm12, %v1831_v57, %v5248_v54 }
  0xc8   : > { %4445 = vmatmul.mubr.msk.f32.vlgmr.msra.gmra.mrb[0].mxu0 %vm214_vm3, %v4442_v40  ;;  %v1835_v59 = vpop.permute.xlu0 %1834 }
  0xc9   : > { %4450 = vmatpush1.msk.msra.mxu0 %vm218_vm1, %v1345_v56  ;;  %1420 = vmatprep.mubr.f32.mxu0 %v4919_v0  ;;  %v1838_v10 = vsel %vm1836_vm12, %v5248_v54, %v1835_v59  ;;  %vm3980_vm12 = vcmask 367616  }
  0xca   : > { %v1999_v60 = vpop.permute.xlu1 %1998  ;;  %4455 = vmatprep.subr.msk.mxu0 %vm218_vm1, %v1510_v58  ;;  %4661 = vmatpush3.msk.msra.mxu1 %vm218_vm1, %v1835_v59  ;;  %v5499_v58 = vld [vmem:[%s5694_s1 + $0xa0] sm:$0xff] }
  0xcb   : > { %4665 = vmatprep.subr.mxu1 %v4919_v0  ;;  %4663 = vmatmul.mubr.msk.f32.vlgmr.msra.gmra.mrb[20].mxu1 %vm214_vm3, %v5265_v61 }
  0xcc   : > { %v5270_v62 = vpop.permute.xlu0 %1996  ;;  %4666 = vmatpush3.msk.msra.mxu1 %vm218_vm1, %v1999_v60  ;;  %4667 = vmatprep.mubr.msk.f32.mxu1 %vm4920_vm0, %v4919_v0 }
  0xcd   : > { %4670 = vmatprep.subr.mxu1 %v4919_v0  ;;  %v2002_v19 = vsel %vm2000_vm13, %v5270_v62, %v1999_v60 }
  0xce   : > { %v5277_v1 = vpop.permute.xlu1 %2160 }
  0xcf   : > { %4668 = vmatmul.mubr.msk.f32.vlgmr.msra.gmra.mrb[22].mxu1 %vm214_vm3, %v5282_v2 }
  0xd0   : > { %4451 = vmatmul.mubr.msk.f32.vlgmr.msra.gmra.mrb[0].mxu0 %vm214_vm3, %v4448_v45  ;;  %v1995_v4 = vpop.permute.xlu0 %1994  ;;  %4672 = vmatprep.mubr.msk.f32.mxu1 %vm4920_vm0, %v4919_v0 }
  0xd1   : > { %4456 = vmatpush1.msk.msra.mxu0 %vm218_vm1, %v1509_v63  ;;  %1584 = vmatprep.mubr.f32.mxu0 %v4919_v0  ;;  %v2001_v25 = vsel %vm2000_vm13, %v1995_v4, %v5270_v62  ;;  %vm4147_vm13 = vcmask 359424  }
  0xd2   : > { %v5292_v5 = vpop.permute.xlu1 %2158  ;;  %4461 = vmatprep.subr.msk.mxu0 %vm218_vm1, %v1674_v3  ;;  %v5529_v3 = vld [vmem:[%s5694_s1 + $0xa8] sm:$0xff] }
  0xd3   : > { %v2165_v32 = vsel %vm2164_vm14, %v5292_v5, %v5277_v1 }
  0xd4   : > { %v2163_v7 = vpop.permute.xlu0 %2162 }
  0xd5   : > { %4671 = vmatpush3.msk.msra.mxu1 %vm218_vm1, %v2163_v7  ;;  %v2166_v27 = vsel %vm2164_vm14, %v5277_v1, %v2163_v7 }
  0xd6   : > { %v2327_v9 = vpop.permute.xlu1 %2326  ;;  %4675 = vmatprep.subr.mxu1 %v4919_v0  ;;  %4673 = vmatmul.mubr.msk.f32.vlgmr.msra.gmra.mrb[24].mxu1 %vm214_vm3, %v5298_v6 }
  0xd7   : > { %4676 = vmatpush3.msk.msra.mxu1 %vm218_vm1, %v2327_v9  ;;  %4677 = vmatprep.mubr.msk.f32.mxu1 %vm4920_vm0, %v4919_v0 }
  0xd8   : > { %4457 = vmatmul.mubr.msk.f32.vlgmr.msra.gmra.mrb[0].mxu0 %vm214_vm3, %v4454_v48  ;;  %v5316_v12 = vpop.permute.xlu0 %2324  ;;  %4680 = vmatprep.subr.mxu1 %v4919_v0 }
  0xd9   : > { %4462 = vmatpush1.msk.msra.mxu0 %vm218_vm1, %v1673_v8  ;;  %1748 = vmatprep.mubr.f32.mxu0 %v4919_v0  ;;  %v2330_v34 = vsel %vm2328_vm15, %v5316_v12, %v2327_v9 }
  0xda   : > { %v5324_v14 = vpop.permute.xlu1 %2488  ;;  %4467 = vmatprep.subr.msk.mxu0 %vm218_vm1, %v1838_v10  ;;  %4678 = vmatmul.mubr.msk.f32.vlgmr.msra.gmra.mrb[26].mxu1 %vm214_vm3, %v5313_v11  ;;  %v4538_v10 = vld [vmem:[%s5694_s1 + $0xb0] sm:$0xff] }
  0xdb   : > { %4682 = vmatprep.mubr.msk.f32.mxu1 %vm4920_vm0, %v4919_v0 }
  0xdc   : > { %v2323_v16 = vpop.permute.xlu0 %2322 }
  0xdd   : > { %v2329_v39 = vsel %vm2328_vm15, %v2323_v16, %v5316_v12 }
  0xde   : > { %v5333_v18 = vpop.permute.xlu1 %2486 }
  0xdf   : > { %v2493_v47 = vsel %vm2492_vm2, %v5333_v18, %v5324_v14  ;;  %v4544_v18 = vld [vmem:[%s5694_s1 + $0xb8] sm:$0xff] }
  0xe0   : > { %4463 = vmatmul.mubr.msk.f32.vlgmr.msra.gmra.mrb[0].mxu0 %vm214_vm3, %v5246_v53  ;;  %v2491_v20 = vpop.permute.xlu0 %2490 }
  0xe1   : > { %4468 = vmatpush1.msk.msra.mxu0 %vm218_vm1, %v1837_v17  ;;  %1912 = vmatprep.mubr.f32.mxu0 %v4919_v0  ;;  %v2494_v41 = vsel %vm2492_vm2, %v5324_v14, %v2491_v20 }
  0xe2   : > { %v5346_v22 = vpop.permute.xlu1 %2654  ;;  %4473 = vmatprep.subr.msk.mxu0 %vm218_vm1, %v2002_v19  ;;  %4681 = vmatpush3.msk.msra.mxu1 %vm218_vm1, %v2491_v20 }
  0xe3   : > { %4683 = vmatmul.mubr.msk.f32.vlgmr.msra.gmra.mrb[28].mxu1 %vm214_vm3, %v5342_v21  ;;  %4685 = vmatprep.subr.mxu1 %v4919_v0 }
  0xe4   : > { %v5353_v23 = vpop.permute.xlu0 %2652  ;;  %4686 = vmatpush3.msk.msra.mxu1 %vm218_vm1, %v5346_v22  ;;  %4687 = vmatprep.mubr.msk.f32.mxu1 %vm4920_vm0, %v4919_v0 }
  0xe5   : > { %4690 = vmatprep.subr.mxu1 %v4919_v0  ;;  %v2658_v49 = vsel %vm2656_vm4, %v5353_v23, %v5346_v22  ;;  %v4550_v22 = vld [vmem:[%s5694_s1 + $0xc0] sm:$0xff] }
  0xe6   : > { %v5367_v26 = vpop.permute.xlu1 %2816 }
  0xe7   : > { %4688 = vmatmul.mubr.msk.f32.vlgmr.msra.gmra.mrb[30].mxu1 %vm214_vm3, %v5362_v24 }
  0xe8   : > { %4469 = vmatmul.mubr.msk.f32.vlgmr.msra.gmra.mrb[0].mxu0 %vm214_vm3, %v5265_v61  ;;  %v2651_v28 = vpop.permute.xlu0 %2650  ;;  %4692 = vmatprep.mubr.msk.f32.mxu1 %vm4920_vm0, %v4919_v0 }
  0xe9   : > { %4474 = vmatpush1.msk.msra.mxu0 %vm218_vm1, %v2001_v25  ;;  %2076 = vmatprep.mubr.f32.mxu0 %v4919_v0  ;;  %v2657_v53 = vsel %vm2656_vm4, %v2651_v28, %v5353_v23 }
  0xea   : > { %v5379_v29 = vpop.permute.xlu1 %2814  ;;  %4479 = vmatprep.subr.msk.mxu0 %vm218_vm1, %v2166_v27 }
  0xeb   : > { %v2821_v61 = vsel %vm2820_vm5, %v5379_v29, %v5367_v26 }
  0xec   : > { %v2819_v31 = vpop.permute.xlu0 %2818 }
  0xed   : > { %4691 = vmatpush3.msk.msra.mxu1 %vm218_vm1, %v2819_v31  ;;  %v2822_v55 = vsel %vm2820_vm5, %v5367_v26, %v2819_v31 }
  0xee   : > { %v5391_v33 = vpop.permute.xlu1 %2982  ;;  %4693 = vmatmul.mubr.msk.f32.vlgmr.msra.gmra.mrb[32].mxu1 %vm214_vm3, %v5385_v30  ;;  %4695 = vmatprep.subr.mxu1 %v4919_v0 }
  0xef   : > { %4696 = vmatpush3.msk.msra.mxu1 %vm218_vm1, %v5391_v33  ;;  %4697 = vmatprep.mubr.msk.f32.mxu1 %vm4920_vm0, %v4919_v0 }
  0xf0   : > { %4475 = vmatmul.mubr.msk.f32.vlgmr.msra.gmra.mrb[0].mxu0 %vm214_vm3, %v5282_v2  ;;  %v5409_v36 = vpop.permute.xlu0 %2980  ;;  %4700 = vmatprep.subr.mxu1 %v4919_v0 }
  0xf1   : > { %4480 = vmatpush1.msk.msra.mxu0 %vm218_vm1, %v2165_v32  ;;  %2240 = vmatprep.mubr.f32.mxu0 %v4919_v0  ;;  %v2986_v62 = vsel %vm2984_vm7, %v5409_v36, %v5391_v33 }
  0xf2   : > { %v5414_v37 = vpop.permute.xlu1 %3144  ;;  %4485 = vmatprep.subr.msk.mxu0 %vm218_vm1, %v2330_v34  ;;  %4698 = vmatmul.mubr.msk.f32.vlgmr.msra.gmra.mrb[34].mxu1 %vm214_vm3, %v5405_v35 }
  0xf3   : > { %4702 = vmatprep.mubr.msk.f32.mxu1 %vm4920_vm0, %v4919_v0 }
  0xf4   : > { %v5421_v38 = vpop.permute.xlu0 %2978 }
  0xf6   : > { %v5425_v40 = vpop.permute.xlu1 %3142 }
  0xf7   : > { %v3149_v14 = vsel %vm3148_vm9, %v5425_v40, %v5414_v37 }
  0xf8   : > { %4481 = vmatmul.mubr.msk.f32.vlgmr.msra.gmra.mrb[0].mxu0 %vm214_vm3, %v5298_v6  ;;  %v5431_v42 = vpop.permute.xlu0 %3146  ;;  %v2985_v6 = vsel %vm2984_vm7, %v5421_v38, %v5409_v36 }
  0xf9   : > { %4486 = vmatpush1.msk.msra.mxu0 %vm218_vm1, %v2329_v39  ;;  %2404 = vmatprep.mubr.f32.mxu0 %v4919_v0  ;;  %v3150_v7 = vsel %vm3148_vm9, %v5414_v37, %v5431_v42 }
  0xfa   : > { %v5440_v44 = vpop.permute.xlu1 %3310  ;;  %4491 = vmatprep.subr.msk.mxu0 %vm218_vm1, %v2494_v41  ;;  %4701 = vmatpush3.msk.msra.mxu1 %vm218_vm1, %v5431_v42 }
  0xfb   : > { %4703 = vmatmul.mubr.msk.f32.vlgmr.msra.gmra.mrb[36].mxu1 %vm214_vm3, %v5436_v43  ;;  %4705 = vmatprep.subr.mxu1 %v4919_v0 }
  0xfc   : > { %v5448_v45 = vpop.permute.xlu0 %3308  ;;  %4706 = vmatpush3.msk.msra.mxu1 %vm218_vm1, %v5440_v44  ;;  %4707 = vmatprep.mubr.msk.f32.mxu1 %vm4920_vm0, %v4919_v0 }
  0xfd   : > { %4710 = vmatprep.subr.mxu1 %v4919_v0  ;;  %v3314_v15 = vsel %vm3312_vm11, %v5448_v45, %v5440_v44 }
  0xfe   : > { %v5463_v48 = vpop.permute.xlu1 %3473 }
  0xff   : > { %4708 = vmatmul.mubr.msk.f32.vlgmr.msra.gmra.mrb[38].mxu1 %vm214_vm3, %v5457_v46 }
 0x100   : > { %4487 = vmatmul.mubr.msk.f32.vlgmr.msra.gmra.mrb[0].mxu0 %vm214_vm3, %v5313_v11  ;;  %v5472_v50 = vpop.permute.xlu0 %3306  ;;  %4712 = vmatprep.mubr.msk.f32.mxu1 %vm4920_vm0, %v4919_v0 }
 0x101   : > { %4492 = vmatpush1.msk.msra.mxu0 %vm218_vm1, %v2493_v47  ;;  %2568 = vmatprep.mubr.f32.mxu0 %v4919_v0 }
 0x102   : > { %v5478_v51 = vpop.permute.xlu1 %3471  ;;  %4497 = vmatprep.subr.msk.mxu0 %vm218_vm1, %v2658_v49 }
 0x103   : > { %v3480_v26 = vsel %vm3479_vm6, %v5478_v51, %v5463_v48 }
 0x104   : > { %v5481_v52 = vpop.permute.xlu0 %3475 }
 0x105   : > { %v3481_v25 = vsel %vm3479_vm6, %v5463_v48, %v5481_v52 }
 0x106   : > { %v5485_v54 = vpop.permute.xlu1 %3642 }
 0x108   : > { %4493 = vmatmul.mubr.msk.f32.vlgmr.msra.gmra.mrb[0].mxu0 %vm214_vm3, %v5342_v21  ;;  %v5491_v56 = vpop.permute.xlu0 %3640 }
 0x109   : > { %4498 = vmatpush1.msk.msra.mxu0 %vm218_vm1, %v2657_v53  ;;  %2732 = vmatprep.mubr.f32.mxu0 %v4919_v0  ;;  %v3648_v27 = vsel %vm3646_vm8, %v5491_v56, %v5485_v54 }
 0x10a   : > { %4503 = vmatprep.subr.msk.mxu0 %vm218_vm1, %v2822_v55 }
 0x10b   : > { %v3478_v57 = vpop.permute.xlu1 %3477 }
 0x10c   : > { %v3482_v59 = vsel %vm3479_vm6, %v5481_v52, %v3478_v57  ;;  %v5503_v60 = vpop.permute.xlu0 %3638 }
 0x10d   : > { %4711 = vmatpush3.msk.msra.mxu1 %vm218_vm1, %v3482_v59  ;;  %v3647_v28 = vsel %vm3646_vm8, %v5503_v60, %v5491_v56 }
 0x10e   : > { %4713 = vmatmul.mubr.msk.f32.vlgmr.msra.gmra.mrb[40].mxu1 %vm214_vm3, %v5499_v58  ;;  %4715 = vmatprep.subr.mxu1 %v4919_v0 }
 0x10f   : > { %v5515_v63 = vpop.permute.xlu1 %3809  ;;  %4717 = vmatprep.mubr.msk.f32.mxu1 %vm4920_vm0, %v4919_v0 }
 0x110   : > { %4499 = vmatmul.mubr.msk.f32.vlgmr.msra.gmra.mrb[0].mxu0 %vm214_vm3, %v5362_v24  ;;  %v5521_v1 = vpop.permute.xlu0 %3807  ;;  %v3313_v24 = vsel %vm3312_vm11, %v5472_v50, %v5448_v45 }
 0x111   : > { %4504 = vmatpush1.msk.msra.mxu0 %vm218_vm1, %v2821_v61  ;;  %2896 = vmatprep.mubr.f32.mxu0 %v4919_v0  ;;  %v3815_v29 = vsel %vm3813_vm10, %v5521_v1, %v5515_v63 }
 0x112   : > { %4509 = vmatprep.subr.msk.mxu0 %vm218_vm1, %v2986_v62 }
 0x113   : > { %v3645_v2 = vpop.permute.xlu1 %3644 }
 0x114   : > { %v3649_v4 = vsel %vm3646_vm8, %v5485_v54, %v3645_v2  ;;  %v5533_v5 = vpop.permute.xlu0 %3805 }
 0x115   : > { %4716 = vmatpush3.msk.msra.mxu1 %vm218_vm1, %v3649_v4 }
 0x116   : > { %4718 = vmatmul.mubr.msk.f32.vlgmr.msra.gmra.mrb[42].mxu1 %vm214_vm3, %v5529_v3  ;;  %4720 = vmatprep.subr.mxu1 %v4919_v0 }
 0x117   : > { %v5545_v8 = vpop.permute.xlu1 %3974  ;;  %4722 = vmatprep.mubr.msk.f32.mxu1 %vm4920_vm0, %v4919_v0 }
 0x118   : > { %4505 = vmatmul.mubr.msk.f32.vlgmr.msra.gmra.mrb[0].mxu0 %vm214_vm3, %v5385_v30  ;;  %v3812_v9 = vpop.permute.xlu0 %3811  ;;  %v3814_v30 = vsel %vm3813_vm10, %v5533_v5, %v5521_v1 }
 0x119   : > { %4510 = vmatpush1.msk.msra.mxu0 %vm218_vm1, %v2985_v6  ;;  %v3816_v11 = vsel %vm3813_vm10, %v5515_v63, %v3812_v9  ;;  %3060 = vmatprep.mubr.f32.mxu0 %v4919_v0 }
 0x11a   : > { %4515 = vmatprep.subr.msk.mxu0 %vm218_vm1, %v3150_v7  ;;  %4721 = vmatpush3.msk.msra.mxu1 %vm218_vm1, %v3816_v11 }
 0x11b   : > { %v3973_v12 = vpop.permute.xlu1 %3972  ;;  %4723 = vmatmul.mubr.msk.f32.vlgmr.msra.gmra.mrb[44].mxu1 %vm214_vm3, %v4538_v10  ;;  %4725 = vmatprep.subr.mxu1 %v4919_v0 }
 0x11c   : > { %v3977_v13 = vpop.permute.xlu0 %3976  ;;  %4727 = vmatprep.mubr.msk.f32.mxu1 %vm4920_vm0, %v4919_v0  ;;  %v3981_v32 = vsel %vm3980_vm12, %v3973_v12, %v5545_v8 }
 0x11d   : > { %v3982_v31 = vsel %vm3980_vm12, %v5545_v8, %v3977_v13 }
 0x11f   : > { %v4142_v16 = vpop.permute.xlu1 %4141 }
 0x120   : > { %4511 = vmatmul.mubr.msk.f32.vlgmr.msra.gmra.mrb[0].mxu0 %vm214_vm3, %v5405_v35  ;;  %v3979_v17 = vpop.permute.xlu0 %3978 }
 0x121   : > { %4516 = vmatpush1.msk.msra.mxu0 %vm218_vm1, %v3149_v14  ;;  %v3983_v19 = vsel %vm3980_vm12, %v3977_v13, %v3979_v17  ;;  %3224 = vmatprep.mubr.f32.mxu0 %v4919_v0 }
 0x122   : > { %4726 = vmatpush3.msk.msra.mxu1 %vm218_vm1, %v3983_v19  ;;  %4521 = vmatprep.subr.msk.mxu0 %vm218_vm1, %v3314_v15 }
 0x123   : > { %4728 = vmatmul.mubr.msk.f32.vlgmr.msra.gmra.mrb[46].mxu1 %vm214_vm3, %v4544_v18  ;;  %v4146_v20 = vpop.permute.xlu1 %4145  ;;  %4730 = vmatprep.subr.mxu1 %v4919_v0 }
 0x124   : > { %v4144_v21 = vpop.permute.xlu0 %4143  ;;  %4732 = vmatprep.mubr.msk.f32.mxu1 %vm4920_vm0, %v4919_v0 }
 0x125   : > { %v4150_v23 = vsel %vm4147_vm13, %v4144_v21, %v4146_v20  ;;  %v4149_v33 = vsel %vm4147_vm13, %v4142_v16, %v4144_v21 }
 0x126   : > { %4731 = vmatpush3.msk.msra.mxu1 %vm218_vm1, %v4150_v23 }
 0x127   : > { %4733 = vmatmul.mubr.msk.f32.vlgmr.msra.gmra.mrb[48].mxu1 %vm214_vm3, %v4550_v22 }
 0x128   : > { %4517 = vmatmul.mubr.msk.f32.vlgmr.msra.gmra.mrb[0].mxu0 %vm214_vm3, %v5436_v43 }
 0x129   : > { %4522 = vmatpush1.msk.msra.mxu0 %vm218_vm1, %v3313_v24  ;;  %3388 = vmatprep.mubr.f32.mxu0 %v4919_v0  ;;  %v4140_v34 = vpop.permute.xlu0 %4139 }
 0x12a   : > { %4527 = vmatprep.subr.msk.mxu0 %vm218_vm1, %v3481_v25  ;;  %v4148_v35 = vsel %vm4147_vm13, %v4140_v34, %v4142_v16 }
 0x130   : > { %4523 = vmatmul.mubr.msk.f32.vlgmr.msra.gmra.mrb[0].mxu0 %vm214_vm3, %v5457_v46 }
 0x131   : > { %4528 = vmatpush1.msk.msra.mxu0 %vm218_vm1, %v3480_v26  ;;  %3556 = vmatprep.mubr.f32.mxu0 %v4919_v0 }
 0x132   : > { %4533 = vmatprep.subr.msk.mxu0 %vm218_vm1, %v3648_v27 }
 0x138   : > { %4529 = vmatmul.mubr.msk.f32.vlgmr.msra.gmra.mrb[0].mxu0 %vm214_vm3, %v5499_v58 }
 0x139   : > { %4534 = vmatpush1.msk.msra.mxu0 %vm218_vm1, %v3647_v28  ;;  %3723 = vmatprep.mubr.f32.mxu0 %v4919_v0 }
 0x13a   : > { %4539 = vmatprep.subr.msk.mxu0 %vm218_vm1, %v3815_v29 }
 0x140   : > { %4535 = vmatmul.mubr.msk.f32.vlgmr.msra.gmra.mrb[0].mxu0 %vm214_vm3, %v5529_v3 }
 0x141   : > { %4540 = vmatpush1.msk.msra.mxu0 %vm218_vm1, %v3814_v30  ;;  %3890 = vmatprep.mubr.f32.mxu0 %v4919_v0 }
 0x142   : > { %4545 = vmatprep.subr.msk.mxu0 %vm218_vm1, %v3982_v31 }
 0x148   : > { %4541 = vmatmul.mubr.msk.f32.vlgmr.msra.gmra.mrb[0].mxu0 %vm214_vm3, %v4538_v10 }
 0x149   : > { %4546 = vmatpush1.msk.msra.mxu0 %vm218_vm1, %v3981_v32  ;;  %4057 = vmatprep.mubr.f32.mxu0 %v4919_v0 }
 0x14a   : > { %4551 = vmatprep.subr.msk.mxu0 %vm218_vm1, %v4149_v33 }
 0x150   : > { %4547 = vmatmul.mubr.msk.f32.vlgmr.msra.gmra.mrb[0].mxu0 %vm214_vm3, %v4544_v18 }
 0x151   : > { %4552 = vmatpush1.msk.msra.mxu0 %vm218_vm1, %v4148_v35  ;;  %4224 = vmatprep.mubr.f32.mxu0 %v4919_v0 }
 0x158   : > { %4553 = vmatmul.mubr.msk.f32.vlgmr.msra.gmra.mrb[0].mxu0 %vm214_vm3, %v4550_v22 }
 0x16a   : > { %v362_v36 = vpop.f32.mrb[0].mxu1 }
 0x16b   : > { %v4614_v37 = vpop.f32.mrb[1].mxu1 }
 0x171   : > { %v512_v38 = vpop.f32.mrb[2].mxu1 }
 0x172   : > { %v513_v39 = vadd.f32 %v512_v38, %v362_v36  ;;  %v4619_v40 = vpop.f32.mrb[3].mxu1 }
 0x176   : > { %v673_v41 = vpop.f32.mrb[4].mxu1 }
 0x177   : > { %v679_v42 = vadd.f32 %v673_v41, %v513_v39  ;;  %v4624_v43 = vpop.f32.mrb[5].mxu1 }
 0x17a   : > { %v837_v44 = vpop.f32.mrb[6].mxu1 }
 0x17b   : > { %v843_v45 = vadd.f32 %v837_v44, %v679_v42  ;;  %v4629_v46 = vpop.f32.mrb[7].mxu1  ;;  %v4308_v44 = vpop.permute.xlu1 %4307 }
 0x17f   : > { %v1001_v47 = vpop.f32.mrb[8].mxu1 }
 0x180   : > { %v1007_v48 = vadd.f32 %v1001_v47, %v843_v45  ;;  %v4634_v49 = vpop.f32.mrb[9].mxu1  ;;  %v4317_v47 = vstv %s4313_s11 }
 0x183   : > { %v1165_v50 = vpop.f32.mrb[10].mxu1 }
 0x184   : > { %v1171_v51 = vadd.f32 %v1165_v50, %v1007_v48  ;;  %v4639_v52 = vpop.f32.mrb[11].mxu1 }
 0x188   : > { %v1329_v0 = vpop.f32.mrb[12].mxu1 }
 0x189   : > { %v1335_v53 = vadd.f32 %v1329_v0, %v1171_v51  ;;  %v4644_v54 = vpop.f32.mrb[13].mxu1 }
 0x18d   : > { %v1493_v55 = vpop.f32.mrb[14].mxu1 }
 0x18e   : > { %v1499_v56 = vadd.f32 %v1493_v55, %v1335_v53  ;;  %v4649_v57 = vpop.f32.mrb[15].mxu1 }
 0x191   : > { %v1657_v58 = vpop.f32.mrb[16].mxu1 }
 0x192   : > { %v1663_v59 = vadd.f32 %v1657_v58, %v1499_v56  ;;  %v4654_v60 = vpop.f32.mrb[17].mxu1 }
 0x195   : > { %v1821_v61 = vpop.f32.mrb[18].mxu1 }
 0x196   : > { %v1827_v62 = vadd.f32 %v1821_v61, %v1663_v59  ;;  %v4659_v63 = vpop.f32.mrb[19].mxu1 }
 0x19e   : > { %v1985_v1 = vpop.f32.mrb[20].mxu1 }
 0x19f   : > { %v1991_v2 = vadd.f32 %v1985_v1, %v1827_v62  ;;  %v4664_v3 = vpop.f32.mrb[21].mxu1 }
 0x1a2   : > { %v2149_v4 = vpop.f32.mrb[22].mxu1 }
 0x1a3   : > { %v2155_v5 = vadd.f32 %v2149_v4, %v1991_v2  ;;  %v4669_v6 = vpop.f32.mrb[23].mxu1 }
 0x1a9   : > { %v2313_v7 = vpop.f32.mrb[24].mxu1 }
 0x1aa   : > { %v2319_v8 = vadd.f32 %v2313_v7, %v2155_v5  ;;  %v4674_v9 = vpop.f32.mrb[25].mxu1 }
 0x1ad   : > { %v2477_v10 = vpop.f32.mrb[26].mxu1 }
 0x1ae   : > { %v2483_v11 = vadd.f32 %v2477_v10, %v2319_v8  ;;  %v4679_v12 = vpop.f32.mrb[27].mxu1 }
 0x1b6   : > { %v2641_v13 = vpop.f32.mrb[28].mxu1 }
 0x1b7   : > { %v2647_v14 = vadd.f32 %v2641_v13, %v2483_v11  ;;  %v4684_v15 = vpop.f32.mrb[29].mxu1 }
 0x1ba   : > { %v2805_v16 = vpop.f32.mrb[30].mxu1 }
 0x1bb   : > { %v2811_v17 = vadd.f32 %v2805_v16, %v2647_v14  ;;  %v4689_v18 = vpop.f32.mrb[31].mxu1 }
 0x1c1   : > { %v2969_v19 = vpop.f32.mrb[32].mxu1 }
 0x1c2   : > { %v2975_v20 = vadd.f32 %v2969_v19, %v2811_v17  ;;  %v4694_v21 = vpop.f32.mrb[33].mxu1 }
 0x1c5   : > { %v3133_v22 = vpop.f32.mrb[34].mxu1 }
 0x1c6   : > { %v3139_v23 = vadd.f32 %v3133_v22, %v2975_v20  ;;  %v4699_v24 = vpop.f32.mrb[35].mxu1 }
 0x1ce   : > { %v3297_v25 = vpop.f32.mrb[36].mxu1 }
 0x1cf   : > { %v3303_v26 = vadd.f32 %v3297_v25, %v3139_v23  ;;  %v4704_v27 = vpop.f32.mrb[37].mxu1 }
 0x1d2   : > { %v3461_v28 = vpop.f32.mrb[38].mxu1 }
 0x1d3   : > { %v3467_v29 = vadd.f32 %v3461_v28, %v3303_v26  ;;  %v4709_v30 = vpop.f32.mrb[39].mxu1 }
 0x1e1   : > { %v3629_v31 = vpop.f32.mrb[40].mxu1 }
 0x1e2   : > { %v3635_v32 = vadd.f32 %v3629_v31, %v3467_v29  ;;  %v4714_v33 = vpop.f32.mrb[41].mxu1 }
 0x1e9   : > { %v3796_v34 = vpop.f32.mrb[42].mxu1 }
 0x1ea   : > { %v3802_v35 = vadd.f32 %v3796_v34, %v3635_v32  ;;  %v4719_v36 = vpop.f32.mrb[43].mxu1 }
 0x1ee   : > { %v3963_v37 = vpop.f32.mrb[44].mxu1 }
 0x1ef   : > { %v3969_v38 = vadd.f32 %v3963_v37, %v3802_v35  ;;  %v4724_v39 = vpop.f32.mrb[45].mxu1 }
 0x1f6   : > { %v4130_v40 = vpop.f32.mrb[46].mxu1 }
 0x1f7   : > { %v4136_v41 = vadd.f32 %v4130_v40, %v3969_v38  ;;  %v4729_v42 = vpop.f32.mrb[47].mxu1 }
 0x1fa   : > { %v4297_v43 = vpop.f32.mrb[48].mxu1 }
 0x1fb   : > { %v4303_v45 = vadd.f32 %v4297_v43, %v4136_v41  ;;  %v4734_v46 = vpop.f32.mrb[49].mxu1 }
 0x1fd   : > { %v4312_v48 = vadd.f32 %v4308_v44, %v4303_v45 }
 0x1ff   : > { %vm4316_vm0 = vcmp.gt.f32.partialorder %v4312_v48, 0.0  ;;  %v4320_v49 = vmul.f32 %v4317_v47, %v4312_v48 }
 0x201   : > { %v4323_v50 = vsel %vm4316_vm0, %v4312_v48, %v4320_v49 }
 0x202   : > { %4326 = vst.msk [vmem:[%s191_s14 + $0x10] sm:$0xff] %vm3312_vm11, %v4323_v50 }
 0x22b   : > { %v4226_v51 = vpop.f32.mrb[0].mxu0 }
 0x22c   : > { %v4310_v52 = vadd.f32 %v4308_v44, %v4226_v51  ;;  %v4228_v0 = vpop.f32.mrb[1].mxu0 }
 0x22d   : > { %v4311_v53 = vadd.f32 %v4308_v44, %v4228_v0 }
 0x22e   : > { %vm4314_vm1 = vcmp.gt.f32.partialorder %v4310_v52, 0.0  ;;  %v4318_v54 = vmul.f32 %v4317_v47, %v4310_v52 }
 0x22f   : > { %vm4315_vm3 = vcmp.gt.f32.partialorder %v4311_v53, 0.0  ;;  %v4319_v55 = vmul.f32 %v4317_v47, %v4311_v53 }
 0x230   : > { %v4321_v56 = vsel %vm4314_vm1, %v4310_v52, %v4318_v54 }
 0x231   : > { %4324 = vst [vmem:[%s191_s14] sm:$0xff] %v4321_v56  ;;  %v4322_v57 = vsel %vm4315_vm3, %v4311_v53, %v4319_v55 }
 0x232   : > { %4325 = vst [vmem:[%s191_s14 + $0x8] sm:$0xff] %v4322_v57 }
 0x233   : > { %4868 = shalt.err (!%p4865_p3)
}
 0x234   : > { %s4869_s6 = scalar_lea.hbm %s5651_s24, 384  ;;  %s4873_s9 = scalar_lea.hbm %s5697_s4, 768 }
 0x235   : > { %p4870_p4 = scmp.ne.s32.totalorder %s5651_s24, %s4869_s6  ;;  %p4874_p9 = scmp.lt.u32.totalorder %s5651_s24, %s5697_s4 }
 0x236   : > { %p4875_p10 = scmp.lt.u32.totalorder %s4873_s9, %s4869_s6  ;;  %p4877_p12 = scmp.lt.u32.totalorder %s4869_s6, %s5651_s24 }
 0x237   : > { %p4871_p7 = pnand %p4870_p4, %p5013_p5 }
 0x238   : > { %p4876_p11 = por %p4875_p10, %p4874_p9 }
 0x239   : > { %p4872_p8 = pneg %p4871_p7 }
 0x23a   : > { %p4878_p13 = por %p4877_p12, %p4876_p11 }
 0x23c   : > { %p4879_p0 = pnand %p4878_p13, %p4872_p8 }
 0x23e   : > { %4882 = shalt.err (!%p4879_p0)
}
 0x23f   : > { %4785 = dma.vmem_to_hbm [thread:$0]  (%p5013_p5), %s5653_s16, 384, %s5651_s24, %s4328_s3  }
 0x240 PF: > { %p4791_p1 = scmp.ge.s32.totalorder %s4917_s20, 2  ;;  %s4354_s12 = sand.u32 1, %s4905_s17  }
 0x241   : > { %s4355_s13 = scalar_lea.sflag [#allocation4], %s4354_s12 }
 0x242   : > { %p4788_p2 = pnand %p4791_p1, %p5017_p6 }
 0x244   : > { %4900 = dma.done.wait (!%p4788_p2), %s4355_s13, 384  }
 0x245   : > { %4902 = vsyncadd (!%p4788_p2), %s4355_s13, 4294966912  ;;  %p15_p3 = scmp.ge.s32.totalorder %s5000_s22, 4   ;;  %s5700_s17 = smov %s4909_s18 }
 0x246   : > { %s5701_s18 = smov %s4913_s19  ;;  %s5702_s19 = smov %s5011_s25 }
 0x247   : > { %s5703_s20 = smov %s5000_s22  ;;  %17 = sbr.rel (!%p15_p3) target bundleno = 5 (0x5), region = 95 }
 0x24e   :  { %4360 = vsyncpa [#allocation4], 1 }
 0x24f   :  { %4362 = vsyncpa [#allocation4 + $0x1], 1 }

</bundles_post_ra>
